<compile_context>
chip_gen: v6e
topology: v6e:2x2x1
jax: 0.10.0
libtpu: 0.0.40
codegen_flags: <defaults>
</compile_context>

<pallas_src>
import functools

import jax
import jax.numpy as jnp
from jax.experimental import pallas as pl
from jax.experimental.pallas import tpu as pltpu


def _odelstm_seq_kernel(gx_ref, ts_ref, whh_ref, fw_ref, fb_ref, fcw_ref, fcb_ref,
                        out_ref, hid_ref,
                        h_scr, c_scr,
                        *, hidden_size, num_linear, solver):
    H = hidden_size
    t = pl.program_id(1)

    # Zero hidden/cell state at the first timestep of every batch block.
    @pl.when(t == 0)
    def _init():
        h_scr[...] = jnp.zeros_like(h_scr)
        c_scr[...] = jnp.zeros_like(c_scr)

    h = h_scr[...]                      # (BB, H)
    c = c_scr[...]                      # (BB, H)
    BB = h.shape[0]

    # ---- nn.LSTMCell ----
    # x @ W_ih^T + bias was precomputed (lane-dense, all T at once) in the wrapper;
    # only the recurrent matmul sits on the serial critical path.
    gates = gx_ref[0] + jnp.dot(h, whh_ref[...], preferred_element_type=jnp.float32)
    i_g = jax.nn.sigmoid(gates[:, 0 * H:1 * H])
    f_g = jax.nn.sigmoid(gates[:, 1 * H:2 * H])
    g_g = jnp.tanh(gates[:, 2 * H:3 * H])
    o_g = jax.nn.sigmoid(gates[:, 3 * H:4 * H])
    new_c = f_g * c + i_g * g_g
    y = o_g * jnp.tanh(new_c)

    # ---- hoisted broadcasts (JAX does not CSE broadcast_in_dim) ----
    dt = jnp.broadcast_to(ts_ref[0] * (1.0 / 3.0), (BB, H))   # delta_t = ts / 3
    dt_half = dt * 0.5
    dt_sixth = dt * (1.0 / 6.0)

    fws = [fw_ref[l] for l in range(num_linear)]
    fbs = [jnp.broadcast_to(fb_ref[l], (BB, H)) for l in range(num_linear)]

    # ---- f_node MLP: Linear -> (Tanh, Linear)* -> Tanh -> Linear ----
    def f_node(z):
        for l in range(num_linear):
            z = jnp.dot(z, fws[l], preferred_element_type=jnp.float32) + fbs[l]
            if l < num_linear - 1:
                z = jnp.tanh(z)
        return z

    # ---- solve_fixed: 3 solver steps with delta_t = ts / 3 ----
    for _ in range(3):
        if solver == 'fixed_euler':
            y = y + dt * f_node(y)
        elif solver == 'fixed_heun':
            k1 = f_node(y)
            k2 = f_node(y + dt * k1)
            y = y + dt_half * (k1 + k2)
        else:  # 'fixed_rk4'
            k1 = f_node(y)
            k2 = f_node(y + k1 * dt_half)
            k3 = f_node(y + k2 * dt_half)
            k4 = f_node(y + k3 * dt)
            y = y + dt_sixth * (k1 + 2.0 * k2 + 2.0 * k3 + k4)

    # Carry state; new_c never leaves VMEM.
    h_scr[...] = y
    c_scr[...] = new_c

    # Per-step module outputs: fc(hidden) and hidden itself.
    hid_ref[0] = y
    out_ref[0] = (jnp.dot(y, fcw_ref[...], preferred_element_type=jnp.float32)
                  + fcb_ref[...])


def odelstm_forward(x, timespans, params, *, solver='fixed_rk4', batch_block=None):
    """Full ODELSTM.forward (fixed-step solver) in a single pallas_call.

    x:         (B, T, input_size)  float32
    timespans: (B, T)              float32
    params: dict with pre-transposed weights:
        w_ih_t (IN, 4H), w_hh_t (H, 4H), bias (1, 4H) = b_ih + b_hh,
        fw (L, H, H), fb (L, 1, H), fc_w_t (H, OUT), fc_b (1, OUT)
    Returns (outputs (B, T, OUT), hiddens (B, T, H)).
    """
    w_ih_t = params['w_ih_t']
    w_hh_t = params['w_hh_t']
    bias = params['bias']
    fw = params['fw']
    fb = params['fb']
    fc_w_t = params['fc_w_t']
    fc_b = params['fc_b']

    B, T, _ = x.shape
    H = w_hh_t.shape[0]
    G = 4 * H
    OUT = fc_w_t.shape[1]
    L = fw.shape[0]

    if batch_block is None:
        batch_block = 8 if (B % 8 == 0) else B
    BB = batch_block
    assert B % BB == 0

    # Hoist the input projection for all timesteps: one big lane-dense matmul.
    gates_x = jnp.einsum('bti,ig->btg', x, w_ih_t) + bias          # (B, T, 4H)
    gx_tm = jnp.transpose(gates_x, (1, 0, 2))                      # (T, B, 4H)
    ts_tm = jnp.transpose(timespans, (1, 0))[:, :, None].astype(jnp.float32)  # (T, B, 1)

    kernel = functools.partial(_odelstm_seq_kernel,
                               hidden_size=H, num_linear=L, solver=solver)

    tstep_map = lambda b, t: (t, b, 0)
    const2 = lambda b, t: (0, 0)
    const3 = lambda b, t: (0, 0, 0)

    out_tm, hid_tm = pl.pallas_call(
        kernel,
        out_shape=(jax.ShapeDtypeStruct((T, B, OUT), jnp.float32),
                   jax.ShapeDtypeStruct((T, B, H), jnp.float32)),
        grid_spec=pltpu.PrefetchScalarGridSpec(
            num_scalar_prefetch=0,
            grid=(B // BB, T),
            in_specs=[
                pl.BlockSpec((1, BB, G), tstep_map),     # precomputed x-gates
                pl.BlockSpec((1, BB, 1), tstep_map),     # ts
                pl.BlockSpec((H, G), const2),            # W_hh^T   (resident)
                pl.BlockSpec((L, H, H), const3),         # f_node W (resident)
                pl.BlockSpec((L, 1, H), const3),         # f_node b (resident)
                pl.BlockSpec((H, OUT), const2),          # fc W^T   (resident)
                pl.BlockSpec((1, OUT), const2),          # fc b     (resident)
            ],
            out_specs=(
                pl.BlockSpec((1, BB, OUT), tstep_map),   # outputs
                pl.BlockSpec((1, BB, H), tstep_map),     # hiddens
            ),
            scratch_shapes=[pltpu.VMEM((BB, H), jnp.float32),    # carried h
                            pltpu.VMEM((BB, H), jnp.float32)],   # carried c
        ),
        compiler_params=pltpu.CompilerParams(
            dimension_semantics=("parallel", "arbitrary")),
    )(gx_tm, ts_tm, w_hh_t, fw, fb, fc_w_t, fc_b)

    outputs = jnp.transpose(out_tm, (1, 0, 2))
    hiddens = jnp.transpose(hid_tm, (1, 0, 2))
    return outputs, hiddens


def _reference_forward(x, timespans, params, *, solver='fixed_rk4'):
    """Pure-JAX reference mirroring the PyTorch ODELSTM forward."""
    w_ih_t = params['w_ih_t']
    w_hh_t = params['w_hh_t']
    bias = params['bias']
    fw = params['fw']
    fb = params['fb']
    fc_w_t = params['fc_w_t']
    fc_b = params['fc_b']

    B, T, _ = x.shape
    H = w_hh_t.shape[0]
    L = fw.shape[0]

    def f_node(y):
        for l in range(L):
            y = y @ fw[l] + fb[l]
            if l < L - 1:
                y = jnp.tanh(y)
        return y

    def rk4(y, dt):
        k1 = f_node(y)
        k2 = f_node(y + k1 * dt * 0.5)
        k3 = f_node(y + k2 * dt * 0.5)
        k4 = f_node(y + k3 * dt)
        return y + dt * (k1 + 2.0 * k2 + 2.0 * k3 + k4) / 6.0

    def euler(y, dt):
        return y + dt * f_node(y)

    def heun(y, dt):
        k1 = f_node(y)
        k2 = f_node(y + dt * k1)
        return y + dt * 0.5 * (k1 + k2)

    step = {'fixed_rk4': rk4, 'fixed_euler': euler, 'fixed_heun': heun}[solver]

    h = jnp.zeros((B, H), jnp.float32)
    c = jnp.zeros((B, H), jnp.float32)
    outs, hids = [], []
    for t in range(T):
        xt = x[:, t]
        ts = timespans[:, t].reshape(-1, 1)
        gates = xt @ w_ih_t + h @ w_hh_t + bias
        i_g = jax.nn.sigmoid(gates[:, 0 * H:1 * H])
        f_g = jax.nn.sigmoid(gates[:, 1 * H:2 * H])
        g_g = jnp.tanh(gates[:, 2 * H:3 * H])
        o_g = jax.nn.sigmoid(gates[:, 3 * H:4 * H])
        c = f_g * c + i_g * g_g
        h = o_g * jnp.tanh(c)
        dt = ts * (1.0 / 3.0)
        for _ in range(3):
            h = step(h, dt)
        outs.append(h @ fc_w_t + fc_b)
        hids.append(h)
    return jnp.stack(outs, axis=1), jnp.stack(hids, axis=1)


if __name__ == "__main__":
    # Small shapes consistent with the module.
    B, T, IN, H, OUT = 16, 8, 16, 32, 8
    NUM_HIDDEN_LAYERS = 2                 # -> num_linear = 3
    L = NUM_HIDDEN_LAYERS + 1

    key = jax.random.PRNGKey(0)
    ks = jax.random.split(key, 12)
    s = 1.0 / jnp.sqrt(H)

    # Parameters with nn.LSTMCell / nn.Linear shapes.
    w_ih = jax.random.uniform(ks[0], (4 * H, IN), jnp.float32, -s, s)
    w_hh = jax.random.uniform(ks[1], (4 * H, H), jnp.float32, -s, s)
    b_ih = jax.random.uniform(ks[2], (4 * H,), jnp.float32, -s, s)
    b_hh = jax.random.uniform(ks[3], (4 * H,), jnp.float32, -s, s)
    f_w = jax.random.uniform(ks[4], (L, H, H), jnp.float32, -s, s)
    f_b = jax.random.uniform(ks[5], (L, H), jnp.float32, -s, s)
    fc_w = jax.random.uniform(ks[6], (OUT, H), jnp.float32, -s, s)
    fc_b = jax.random.uniform(ks[7], (OUT,), jnp.float32, -s, s)

    params = dict(
        w_ih_t=jnp.transpose(w_ih),                 # (IN, 4H)
        w_hh_t=jnp.transpose(w_hh),                 # (H, 4H)
        bias=(b_ih + b_hh).reshape(1, 4 * H),       # (1, 4H)
        fw=jnp.transpose(f_w, (0, 2, 1)),           # (L, H, H)  (y @ W.T form)
        fb=f_b.reshape(L, 1, H),                    # (L, 1, H)
        fc_w_t=jnp.transpose(fc_w),                 # (H, OUT)
        fc_b=fc_b.reshape(1, OUT),                  # (1, OUT)
    )

    # Deterministic inputs.
    x = jax.random.normal(ks[8], (B, T, IN), jnp.float32)
    timespans = jax.random.uniform(ks[9], (B, T), jnp.float32, 0.1, 1.0)

    outs, hids = odelstm_forward(x, timespans, params, solver='fixed_rk4')
    jax.block_until_ready((outs, hids))

    ref_o, ref_h = _reference_forward(x, timespans, params, solver='fixed_rk4')
    assert jnp.allclose(outs, ref_o, atol=1e-4, rtol=1e-4)
    assert jnp.allclose(hids, ref_h, atol=1e-4, rtol=1e-4)

    print("KERNEL_OK")
</pallas_src>

<mosaic_0001>
module attributes {stable_mosaic.version = 11 : i64} {
  func.func @_odelstm_seq_kernel(%arg0: i32, %arg1: i32, %arg2: memref<1x8x128xf32, #tpu.memory_space<vmem>>, %arg3: memref<1x8x1xf32, #tpu.memory_space<vmem>>, %arg4: memref<32x128xf32, #tpu.memory_space<vmem>>, %arg5: memref<3x32x32xf32, #tpu.memory_space<vmem>>, %arg6: memref<3x1x32xf32, #tpu.memory_space<vmem>>, %arg7: memref<32x8xf32, #tpu.memory_space<vmem>>, %arg8: memref<1x8xf32, #tpu.memory_space<vmem>>, %arg9: memref<1x8x8xf32, #tpu.memory_space<vmem>>, %arg10: memref<1x8x32xf32, #tpu.memory_space<vmem>>, %arg11: memref<8x32xf32, #tpu.memory_space<vmem>>, %arg12: memref<8x32xf32, #tpu.memory_space<vmem>>) attributes {dimension_semantics = [#tpu.dimension_semantics<parallel>, #tpu.dimension_semantics<arbitrary>], iteration_bounds = array<i64: 2, 8>, scalar_prefetch = 0 : i64, scratch_operands = 2 : i64, tpu.core_type = #tpu.core_type<tc>, window_params = [{transform_indices = @transform_0, window_bounds = array<i64: 1, 8, 128>}, {transform_indices = @transform_1, window_bounds = array<i64: 1, 8, 1>}, {pipeline_mode = #tpu.pipeline_mode<synchronous>, transform_indices = @transform_2, window_bounds = array<i64: 32, 128>}, {pipeline_mode = #tpu.pipeline_mode<synchronous>, transform_indices = @transform_3, window_bounds = array<i64: 3, 32, 32>}, {pipeline_mode = #tpu.pipeline_mode<synchronous>, transform_indices = @transform_4, window_bounds = array<i64: 3, 1, 32>}, {pipeline_mode = #tpu.pipeline_mode<synchronous>, transform_indices = @transform_5, window_bounds = array<i64: 32, 8>}, {pipeline_mode = #tpu.pipeline_mode<synchronous>, transform_indices = @transform_6, window_bounds = array<i64: 1, 8>}, {transform_indices = @transform_7, window_bounds = array<i64: 1, 8, 8>}, {transform_indices = @transform_8, window_bounds = array<i64: 1, 8, 32>}]} {
    %c0_i32 = arith.constant 0 : i32
    %0 = arith.cmpi eq, %arg1, %c0_i32 : i32
    %1 = arith.extui %0 : i1 to i32
    %c0_i32_0 = arith.constant 0 : i32
    %2 = arith.cmpi ne, %1, %c0_i32_0 : i32
    scf.if %2 {
      %cst_91 = arith.constant 0.000000e+00 : f32
      %217 = vector.broadcast %cst_91 : f32 to vector<8x32xf32>
      %c0_92 = arith.constant 0 : index
      %c0_93 = arith.constant 0 : index
      %218 = vector.load %arg11[%c0_92, %c0_93] : memref<8x32xf32, #tpu.memory_space<vmem>>, vector<8x32xf32>
      tpu.vector_store %arg11[%c0_92, %c0_93], %217 {strides = array<i32>} : memref<8x32xf32, #tpu.memory_space<vmem>>, vector<8x32xf32>,
      %cst_94 = arith.constant 0.000000e+00 : f32
      %219 = vector.broadcast %cst_94 : f32 to vector<8x32xf32>
      %c0_95 = arith.constant 0 : index
      %c0_96 = arith.constant 0 : index
      %220 = vector.load %arg12[%c0_95, %c0_96] : memref<8x32xf32, #tpu.memory_space<vmem>>, vector<8x32xf32>
      tpu.vector_store %arg12[%c0_95, %c0_96], %219 {strides = array<i32>} : memref<8x32xf32, #tpu.memory_space<vmem>>, vector<8x32xf32>,
    } else {
    }
    %c0 = arith.constant 0 : index
    %c0_1 = arith.constant 0 : index
    %3 = vector.load %arg11[%c0, %c0_1] : memref<8x32xf32, #tpu.memory_space<vmem>>, vector<8x32xf32>
    %c0_2 = arith.constant 0 : index
    %c0_3 = arith.constant 0 : index
    %4 = vector.load %arg12[%c0_2, %c0_3] : memref<8x32xf32, #tpu.memory_space<vmem>>, vector<8x32xf32>
    %c0_4 = arith.constant 0 : index
    %c0_5 = arith.constant 0 : index
    %c0_6 = arith.constant 0 : index
    %5 = vector.load %arg2[%c0_4, %c0_5, %c0_6] : memref<1x8x128xf32, #tpu.memory_space<vmem>>, vector<1x8x128xf32>
    %6 = vector.shape_cast %5 : vector<1x8x128xf32> to vector<8x128xf32>
    %c0_7 = arith.constant 0 : index
    %c0_8 = arith.constant 0 : index
    %7 = vector.load %arg4[%c0_7, %c0_8] : memref<32x128xf32, #tpu.memory_space<vmem>>, vector<32x128xf32>
    %cst = arith.constant dense<0.000000e+00> : vector<8x128xf32>
    %8 = tpu.matmul %3, %7, %cst {dimension_numbers = #tpu.dot_dimension_numbers<[1], [0], [0], [1], [0, 0, 1, 1], [], []>} : vector<8x32xf32>, vector<32x128xf32>, vector<8x128xf32> -> vector<8x128xf32>
    %9 = arith.addf %6, %8 : vector<8x128xf32>
    %10 = vector.extract_strided_slice %9 {offsets = [0, 0], sizes = [8, 32], strides = [1, 1]} : vector<8x128xf32> to vector<8x32xf32>
    %11 = arith.negf %10 : vector<8x32xf32>
    %12 = math.exp %11 : vector<8x32xf32>
    %cst_9 = arith.constant 1.000000e+00 : f32
    %13 = vector.broadcast %cst_9 : f32 to vector<8x32xf32>
    %14 = arith.addf %13, %12 : vector<8x32xf32>
    %15 = arith.divf %13, %14 : vector<8x32xf32>
    %16 = vector.extract_strided_slice %9 {offsets = [0, 32], sizes = [8, 32], strides = [1, 1]} : vector<8x128xf32> to vector<8x32xf32>
    %17 = arith.negf %16 : vector<8x32xf32>
    %18 = math.exp %17 : vector<8x32xf32>
    %cst_10 = arith.constant 1.000000e+00 : f32
    %19 = vector.broadcast %cst_10 : f32 to vector<8x32xf32>
    %20 = arith.addf %19, %18 : vector<8x32xf32>
    %21 = arith.divf %19, %20 : vector<8x32xf32>
    %22 = vector.extract_strided_slice %9 {offsets = [0, 64], sizes = [8, 32], strides = [1, 1]} : vector<8x128xf32> to vector<8x32xf32>
    %23 = math.tanh %22 : vector<8x32xf32>
    %24 = vector.extract_strided_slice %9 {offsets = [0, 96], sizes = [8, 32], strides = [1, 1]} : vector<8x128xf32> to vector<8x32xf32>
    %25 = arith.negf %24 : vector<8x32xf32>
    %26 = math.exp %25 : vector<8x32xf32>
    %cst_11 = arith.constant 1.000000e+00 : f32
    %27 = vector.broadcast %cst_11 : f32 to vector<8x32xf32>
    %28 = arith.addf %27, %26 : vector<8x32xf32>
    %29 = arith.divf %27, %28 : vector<8x32xf32>
    %30 = arith.mulf %21, %4 : vector<8x32xf32>
    %31 = arith.mulf %15, %23 : vector<8x32xf32>
    %32 = arith.addf %30, %31 : vector<8x32xf32>
    %33 = math.tanh %32 : vector<8x32xf32>
    %34 = arith.mulf %29, %33 : vector<8x32xf32>
    %c0_12 = arith.constant 0 : index
    %c0_13 = arith.constant 0 : index
    %c0_14 = arith.constant 0 : index
    %35 = vector.load %arg3[%c0_12, %c0_13, %c0_14] : memref<1x8x1xf32, #tpu.memory_space<vmem>>, vector<1x8x1xf32>
    %36 = vector.shape_cast %35 : vector<1x8x1xf32> to vector<8x1xf32>
    %cst_15 = arith.constant 0.333333343 : f32
    %37 = vector.broadcast %cst_15 : f32 to vector<8x1xf32>
    %38 = arith.mulf %36, %37 : vector<8x1xf32>
    %39 = vector.shape_cast %38 : vector<8x1xf32> to vector<8x1xf32>
    %40 = vector.broadcast %39 : vector<8x1xf32> to vector<8x32xf32>
    %cst_16 = arith.constant 5.000000e-01 : f32
    %41 = vector.broadcast %cst_16 : f32 to vector<8x32xf32>
    %42 = arith.mulf %40, %41 : vector<8x32xf32>
    %cst_17 = arith.constant 0.166666672 : f32
    %43 = vector.broadcast %cst_17 : f32 to vector<8x32xf32>
    %44 = arith.mulf %40, %43 : vector<8x32xf32>
    %c0_18 = arith.constant 0 : index
    %c0_19 = arith.constant 0 : index
    %c0_20 = arith.constant 0 : index
    %45 = vector.load %arg5[%c0_18, %c0_19, %c0_20] : memref<3x32x32xf32, #tpu.memory_space<vmem>>, vector<1x32x32xf32>
    %46 = vector.shape_cast %45 : vector<1x32x32xf32> to vector<32x32xf32>
    %c1 = arith.constant 1 : index
    %c0_21 = arith.constant 0 : index
    %c0_22 = arith.constant 0 : index
    %47 = vector.load %arg5[%c1, %c0_21, %c0_22] : memref<3x32x32xf32, #tpu.memory_space<vmem>>, vector<1x32x32xf32>
    %48 = vector.shape_cast %47 : vector<1x32x32xf32> to vector<32x32xf32>
    %c2 = arith.constant 2 : index
    %c0_23 = arith.constant 0 : index
    %c0_24 = arith.constant 0 : index
    %49 = vector.load %arg5[%c2, %c0_23, %c0_24] : memref<3x32x32xf32, #tpu.memory_space<vmem>>, vector<1x32x32xf32>
    %50 = vector.shape_cast %49 : vector<1x32x32xf32> to vector<32x32xf32>
    %c0_25 = arith.constant 0 : index
    %c0_26 = arith.constant 0 : index
    %c0_27 = arith.constant 0 : index
    %51 = vector.load %arg6[%c0_25, %c0_26, %c0_27] : memref<3x1x32xf32, #tpu.memory_space<vmem>>, vector<1x1x32xf32>
    %52 = vector.shape_cast %51 : vector<1x1x32xf32> to vector<1x32xf32>
    %53 = vector.shape_cast %52 : vector<1x32xf32> to vector<1x32xf32>
    %54 = vector.broadcast %53 : vector<1x32xf32> to vector<8x32xf32>
    %c1_28 = arith.constant 1 : index
    %c0_29 = arith.constant 0 : index
    %c0_30 = arith.constant 0 : index
    %55 = vector.load %arg6[%c1_28, %c0_29, %c0_30] : memref<3x1x32xf32, #tpu.memory_space<vmem>>, vector<1x1x32xf32>
    %56 = vector.shape_cast %55 : vector<1x1x32xf32> to vector<1x32xf32>
    %57 = vector.shape_cast %56 : vector<1x32xf32> to vector<1x32xf32>
    %58 = vector.broadcast %57 : vector<1x32xf32> to vector<8x32xf32>
    %c2_31 = arith.constant 2 : index
    %c0_32 = arith.constant 0 : index
    %c0_33 = arith.constant 0 : index
    %59 = vector.load %arg6[%c2_31, %c0_32, %c0_33] : memref<3x1x32xf32, #tpu.memory_space<vmem>>, vector<1x1x32xf32>
    %60 = vector.shape_cast %59 : vector<1x1x32xf32> to vector<1x32xf32>
    %61 = vector.shape_cast %60 : vector<1x32xf32> to vector<1x32xf32>
    %62 = vector.broadcast %61 : vector<1x32xf32> to vector<8x32xf32>
    %cst_34 = arith.constant dense<0.000000e+00> : vector<8x32xf32>
    %63 = tpu.matmul %34, %46, %cst_34 {dimension_numbers = #tpu.dot_dimension_numbers<[1], [0], [0], [1], [0, 0, 1, 1], [], []>} : vector<8x32xf32>, vector<32x32xf32>, vector<8x32xf32> -> vector<8x32xf32>
    %64 = arith.addf %63, %54 : vector<8x32xf32>
    %65 = math.tanh %64 : vector<8x32xf32>
    %cst_35 = arith.constant dense<0.000000e+00> : vector<8x32xf32>
    %66 = tpu.matmul %65, %48, %cst_35 {dimension_numbers = #tpu.dot_dimension_numbers<[1], [0], [0], [1], [0, 0, 1, 1], [], []>} : vector<8x32xf32>, vector<32x32xf32>, vector<8x32xf32> -> vector<8x32xf32>
    %67 = arith.addf %66, %58 : vector<8x32xf32>
    %68 = math.tanh %67 : vector<8x32xf32>
    %cst_36 = arith.constant dense<0.000000e+00> : vector<8x32xf32>
    %69 = tpu.matmul %68, %50, %cst_36 {dimension_numbers = #tpu.dot_dimension_numbers<[1], [0], [0], [1], [0, 0, 1, 1], [], []>} : vector<8x32xf32>, vector<32x32xf32>, vector<8x32xf32> -> vector<8x32xf32>
    %70 = arith.addf %69, %62 : vector<8x32xf32>
    %71 = arith.mulf %70, %42 : vector<8x32xf32>
    %72 = arith.addf %34, %71 : vector<8x32xf32>
    %cst_37 = arith.constant dense<0.000000e+00> : vector<8x32xf32>
    %73 = tpu.matmul %72, %46, %cst_37 {dimension_numbers = #tpu.dot_dimension_numbers<[1], [0], [0], [1], [0, 0, 1, 1], [], []>} : vector<8x32xf32>, vector<32x32xf32>, vector<8x32xf32> -> vector<8x32xf32>
    %74 = arith.addf %73, %54 : vector<8x32xf32>
    %75 = math.tanh %74 : vector<8x32xf32>
    %cst_38 = arith.constant dense<0.000000e+00> : vector<8x32xf32>
    %76 = tpu.matmul %75, %48, %cst_38 {dimension_numbers = #tpu.dot_dimension_numbers<[1], [0], [0], [1], [0, 0, 1, 1], [], []>} : vector<8x32xf32>, vector<32x32xf32>, vector<8x32xf32> -> vector<8x32xf32>
    %77 = arith.addf %76, %58 : vector<8x32xf32>
    %78 = math.tanh %77 : vector<8x32xf32>
    %cst_39 = arith.constant dense<0.000000e+00> : vector<8x32xf32>
    %79 = tpu.matmul %78, %50, %cst_39 {dimension_numbers = #tpu.dot_dimension_numbers<[1], [0], [0], [1], [0, 0, 1, 1], [], []>} : vector<8x32xf32>, vector<32x32xf32>, vector<8x32xf32> -> vector<8x32xf32>
    %80 = arith.addf %79, %62 : vector<8x32xf32>
    %81 = arith.mulf %80, %42 : vector<8x32xf32>
    %82 = arith.addf %34, %81 : vector<8x32xf32>
    %cst_40 = arith.constant dense<0.000000e+00> : vector<8x32xf32>
    %83 = tpu.matmul %82, %46, %cst_40 {dimension_numbers = #tpu.dot_dimension_numbers<[1], [0], [0], [1], [0, 0, 1, 1], [], []>} : vector<8x32xf32>, vector<32x32xf32>, vector<8x32xf32> -> vector<8x32xf32>
    %84 = arith.addf %83, %54 : vector<8x32xf32>
    %85 = math.tanh %84 : vector<8x32xf32>
    %cst_41 = arith.constant dense<0.000000e+00> : vector<8x32xf32>
    %86 = tpu.matmul %85, %48, %cst_41 {dimension_numbers = #tpu.dot_dimension_numbers<[1], [0], [0], [1], [0, 0, 1, 1], [], []>} : vector<8x32xf32>, vector<32x32xf32>, vector<8x32xf32> -> vector<8x32xf32>
    %87 = arith.addf %86, %58 : vector<8x32xf32>
    %88 = math.tanh %87 : vector<8x32xf32>
    %cst_42 = arith.constant dense<0.000000e+00> : vector<8x32xf32>
    %89 = tpu.matmul %88, %50, %cst_42 {dimension_numbers = #tpu.dot_dimension_numbers<[1], [0], [0], [1], [0, 0, 1, 1], [], []>} : vector<8x32xf32>, vector<32x32xf32>, vector<8x32xf32> -> vector<8x32xf32>
    %90 = arith.addf %89, %62 : vector<8x32xf32>
    %91 = arith.mulf %90, %40 : vector<8x32xf32>
    %92 = arith.addf %34, %91 : vector<8x32xf32>
    %cst_43 = arith.constant dense<0.000000e+00> : vector<8x32xf32>
    %93 = tpu.matmul %92, %46, %cst_43 {dimension_numbers = #tpu.dot_dimension_numbers<[1], [0], [0], [1], [0, 0, 1, 1], [], []>} : vector<8x32xf32>, vector<32x32xf32>, vector<8x32xf32> -> vector<8x32xf32>
    %94 = arith.addf %93, %54 : vector<8x32xf32>
    %95 = math.tanh %94 : vector<8x32xf32>
    %cst_44 = arith.constant dense<0.000000e+00> : vector<8x32xf32>
    %96 = tpu.matmul %95, %48, %cst_44 {dimension_numbers = #tpu.dot_dimension_numbers<[1], [0], [0], [1], [0, 0, 1, 1], [], []>} : vector<8x32xf32>, vector<32x32xf32>, vector<8x32xf32> -> vector<8x32xf32>
    %97 = arith.addf %96, %58 : vector<8x32xf32>
    %98 = math.tanh %97 : vector<8x32xf32>
    %cst_45 = arith.constant dense<0.000000e+00> : vector<8x32xf32>
    %99 = tpu.matmul %98, %50, %cst_45 {dimension_numbers = #tpu.dot_dimension_numbers<[1], [0], [0], [1], [0, 0, 1, 1], [], []>} : vector<8x32xf32>, vector<32x32xf32>, vector<8x32xf32> -> vector<8x32xf32>
    %100 = arith.addf %99, %62 : vector<8x32xf32>
    %cst_46 = arith.constant 2.000000e+00 : f32
    %101 = vector.broadcast %cst_46 : f32 to vector<8x32xf32>
    %102 = arith.mulf %101, %80 : vector<8x32xf32>
    %103 = arith.addf %70, %102 : vector<8x32xf32>
    %cst_47 = arith.constant 2.000000e+00 : f32
    %104 = vector.broadcast %cst_47 : f32 to vector<8x32xf32>
    %105 = arith.mulf %104, %90 : vector<8x32xf32>
    %106 = arith.addf %103, %105 : vector<8x32xf32>
    %107 = arith.addf %106, %100 : vector<8x32xf32>
    %108 = arith.mulf %44, %107 : vector<8x32xf32>
    %109 = arith.addf %34, %108 : vector<8x32xf32>
    %cst_48 = arith.constant dense<0.000000e+00> : vector<8x32xf32>
    %110 = tpu.matmul %109, %46, %cst_48 {dimension_numbers = #tpu.dot_dimension_numbers<[1], [0], [0], [1], [0, 0, 1, 1], [], []>} : vector<8x32xf32>, vector<32x32xf32>, vector<8x32xf32> -> vector<8x32xf32>
    %111 = arith.addf %110, %54 : vector<8x32xf32>
    %112 = math.tanh %111 : vector<8x32xf32>
    %cst_49 = arith.constant dense<0.000000e+00> : vector<8x32xf32>
    %113 = tpu.matmul %112, %48, %cst_49 {dimension_numbers = #tpu.dot_dimension_numbers<[1], [0], [0], [1], [0, 0, 1, 1], [], []>} : vector<8x32xf32>, vector<32x32xf32>, vector<8x32xf32> -> vector<8x32xf32>
    %114 = arith.addf %113, %58 : vector<8x32xf32>
    %115 = math.tanh %114 : vector<8x32xf32>
    %cst_50 = arith.constant dense<0.000000e+00> : vector<8x32xf32>
    %116 = tpu.matmul %115, %50, %cst_50 {dimension_numbers = #tpu.dot_dimension_numbers<[1], [0], [0], [1], [0, 0, 1, 1], [], []>} : vector<8x32xf32>, vector<32x32xf32>, vector<8x32xf32> -> vector<8x32xf32>
    %117 = arith.addf %116, %62 : vector<8x32xf32>
    %118 = arith.mulf %117, %42 : vector<8x32xf32>
    %119 = arith.addf %109, %118 : vector<8x32xf32>
    %cst_51 = arith.constant dense<0.000000e+00> : vector<8x32xf32>
    %120 = tpu.matmul %119, %46, %cst_51 {dimension_numbers = #tpu.dot_dimension_numbers<[1], [0], [0], [1], [0, 0, 1, 1], [], []>} : vector<8x32xf32>, vector<32x32xf32>, vector<8x32xf32> -> vector<8x32xf32>
    %121 = arith.addf %120, %54 : vector<8x32xf32>
    %122 = math.tanh %121 : vector<8x32xf32>
    %cst_52 = arith.constant dense<0.000000e+00> : vector<8x32xf32>
    %123 = tpu.matmul %122, %48, %cst_52 {dimension_numbers = #tpu.dot_dimension_numbers<[1], [0], [0], [1], [0, 0, 1, 1], [], []>} : vector<8x32xf32>, vector<32x32xf32>, vector<8x32xf32> -> vector<8x32xf32>
    %124 = arith.addf %123, %58 : vector<8x32xf32>
    %125 = math.tanh %124 : vector<8x32xf32>
    %cst_53 = arith.constant dense<0.000000e+00> : vector<8x32xf32>
    %126 = tpu.matmul %125, %50, %cst_53 {dimension_numbers = #tpu.dot_dimension_numbers<[1], [0], [0], [1], [0, 0, 1, 1], [], []>} : vector<8x32xf32>, vector<32x32xf32>, vector<8x32xf32> -> vector<8x32xf32>
    %127 = arith.addf %126, %62 : vector<8x32xf32>
    %128 = arith.mulf %127, %42 : vector<8x32xf32>
    %129 = arith.addf %109, %128 : vector<8x32xf32>
    %cst_54 = arith.constant dense<0.000000e+00> : vector<8x32xf32>
    %130 = tpu.matmul %129, %46, %cst_54 {dimension_numbers = #tpu.dot_dimension_numbers<[1], [0], [0], [1], [0, 0, 1, 1], [], []>} : vector<8x32xf32>, vector<32x32xf32>, vector<8x32xf32> -> vector<8x32xf32>
    %131 = arith.addf %130, %54 : vector<8x32xf32>
    %132 = math.tanh %131 : vector<8x32xf32>
    %cst_55 = arith.constant dense<0.000000e+00> : vector<8x32xf32>
    %133 = tpu.matmul %132, %48, %cst_55 {dimension_numbers = #tpu.dot_dimension_numbers<[1], [0], [0], [1], [0, 0, 1, 1], [], []>} : vector<8x32xf32>, vector<32x32xf32>, vector<8x32xf32> -> vector<8x32xf32>
    %134 = arith.addf %133, %58 : vector<8x32xf32>
    %135 = math.tanh %134 : vector<8x32xf32>
    %cst_56 = arith.constant dense<0.000000e+00> : vector<8x32xf32>
    %136 = tpu.matmul %135, %50, %cst_56 {dimension_numbers = #tpu.dot_dimension_numbers<[1], [0], [0], [1], [0, 0, 1, 1], [], []>} : vector<8x32xf32>, vector<32x32xf32>, vector<8x32xf32> -> vector<8x32xf32>
    %137 = arith.addf %136, %62 : vector<8x32xf32>
    %138 = arith.mulf %137, %40 : vector<8x32xf32>
    %139 = arith.addf %109, %138 : vector<8x32xf32>
    %cst_57 = arith.constant dense<0.000000e+00> : vector<8x32xf32>
    %140 = tpu.matmul %139, %46, %cst_57 {dimension_numbers = #tpu.dot_dimension_numbers<[1], [0], [0], [1], [0, 0, 1, 1], [], []>} : vector<8x32xf32>, vector<32x32xf32>, vector<8x32xf32> -> vector<8x32xf32>
    %141 = arith.addf %140, %54 : vector<8x32xf32>
    %142 = math.tanh %141 : vector<8x32xf32>
    %cst_58 = arith.constant dense<0.000000e+00> : vector<8x32xf32>
    %143 = tpu.matmul %142, %48, %cst_58 {dimension_numbers = #tpu.dot_dimension_numbers<[1], [0], [0], [1], [0, 0, 1, 1], [], []>} : vector<8x32xf32>, vector<32x32xf32>, vector<8x32xf32> -> vector<8x32xf32>
    %144 = arith.addf %143, %58 : vector<8x32xf32>
    %145 = math.tanh %144 : vector<8x32xf32>
    %cst_59 = arith.constant dense<0.000000e+00> : vector<8x32xf32>
    %146 = tpu.matmul %145, %50, %cst_59 {dimension_numbers = #tpu.dot_dimension_numbers<[1], [0], [0], [1], [0, 0, 1, 1], [], []>} : vector<8x32xf32>, vector<32x32xf32>, vector<8x32xf32> -> vector<8x32xf32>
    %147 = arith.addf %146, %62 : vector<8x32xf32>
    %cst_60 = arith.constant 2.000000e+00 : f32
    %148 = vector.broadcast %cst_60 : f32 to vector<8x32xf32>
    %149 = arith.mulf %148, %127 : vector<8x32xf32>
    %150 = arith.addf %117, %149 : vector<8x32xf32>
    %cst_61 = arith.constant 2.000000e+00 : f32
    %151 = vector.broadcast %cst_61 : f32 to vector<8x32xf32>
    %152 = arith.mulf %151, %137 : vector<8x32xf32>
    %153 = arith.addf %150, %152 : vector<8x32xf32>
    %154 = arith.addf %153, %147 : vector<8x32xf32>
    %155 = arith.mulf %44, %154 : vector<8x32xf32>
    %156 = arith.addf %109, %155 : vector<8x32xf32>
    %cst_62 = arith.constant dense<0.000000e+00> : vector<8x32xf32>
    %157 = tpu.matmul %156, %46, %cst_62 {dimension_numbers = #tpu.dot_dimension_numbers<[1], [0], [0], [1], [0, 0, 1, 1], [], []>} : vector<8x32xf32>, vector<32x32xf32>, vector<8x32xf32> -> vector<8x32xf32>
    %158 = arith.addf %157, %54 : vector<8x32xf32>
    %159 = math.tanh %158 : vector<8x32xf32>
    %cst_63 = arith.constant dense<0.000000e+00> : vector<8x32xf32>
    %160 = tpu.matmul %159, %48, %cst_63 {dimension_numbers = #tpu.dot_dimension_numbers<[1], [0], [0], [1], [0, 0, 1, 1], [], []>} : vector<8x32xf32>, vector<32x32xf32>, vector<8x32xf32> -> vector<8x32xf32>
    %161 = arith.addf %160, %58 : vector<8x32xf32>
    %162 = math.tanh %161 : vector<8x32xf32>
    %cst_64 = arith.constant dense<0.000000e+00> : vector<8x32xf32>
    %163 = tpu.matmul %162, %50, %cst_64 {dimension_numbers = #tpu.dot_dimension_numbers<[1], [0], [0], [1], [0, 0, 1, 1], [], []>} : vector<8x32xf32>, vector<32x32xf32>, vector<8x32xf32> -> vector<8x32xf32>
    %164 = arith.addf %163, %62 : vector<8x32xf32>
    %165 = arith.mulf %164, %42 : vector<8x32xf32>
    %166 = arith.addf %156, %165 : vector<8x32xf32>
    %cst_65 = arith.constant dense<0.000000e+00> : vector<8x32xf32>
    %167 = tpu.matmul %166, %46, %cst_65 {dimension_numbers = #tpu.dot_dimension_numbers<[1], [0], [0], [1], [0, 0, 1, 1], [], []>} : vector<8x32xf32>, vector<32x32xf32>, vector<8x32xf32> -> vector<8x32xf32>
    %168 = arith.addf %167, %54 : vector<8x32xf32>
    %169 = math.tanh %168 : vector<8x32xf32>
    %cst_66 = arith.constant dense<0.000000e+00> : vector<8x32xf32>
    %170 = tpu.matmul %169, %48, %cst_66 {dimension_numbers = #tpu.dot_dimension_numbers<[1], [0], [0], [1], [0, 0, 1, 1], [], []>} : vector<8x32xf32>, vector<32x32xf32>, vector<8x32xf32> -> vector<8x32xf32>
    %171 = arith.addf %170, %58 : vector<8x32xf32>
    %172 = math.tanh %171 : vector<8x32xf32>
    %cst_67 = arith.constant dense<0.000000e+00> : vector<8x32xf32>
    %173 = tpu.matmul %172, %50, %cst_67 {dimension_numbers = #tpu.dot_dimension_numbers<[1], [0], [0], [1], [0, 0, 1, 1], [], []>} : vector<8x32xf32>, vector<32x32xf32>, vector<8x32xf32> -> vector<8x32xf32>
    %174 = arith.addf %173, %62 : vector<8x32xf32>
    %175 = arith.mulf %174, %42 : vector<8x32xf32>
    %176 = arith.addf %156, %175 : vector<8x32xf32>
    %cst_68 = arith.constant dense<0.000000e+00> : vector<8x32xf32>
    %177 = tpu.matmul %176, %46, %cst_68 {dimension_numbers = #tpu.dot_dimension_numbers<[1], [0], [0], [1], [0, 0, 1, 1], [], []>} : vector<8x32xf32>, vector<32x32xf32>, vector<8x32xf32> -> vector<8x32xf32>
    %178 = arith.addf %177, %54 : vector<8x32xf32>
    %179 = math.tanh %178 : vector<8x32xf32>
    %cst_69 = arith.constant dense<0.000000e+00> : vector<8x32xf32>
    %180 = tpu.matmul %179, %48, %cst_69 {dimension_numbers = #tpu.dot_dimension_numbers<[1], [0], [0], [1], [0, 0, 1, 1], [], []>} : vector<8x32xf32>, vector<32x32xf32>, vector<8x32xf32> -> vector<8x32xf32>
    %181 = arith.addf %180, %58 : vector<8x32xf32>
    %182 = math.tanh %181 : vector<8x32xf32>
    %cst_70 = arith.constant dense<0.000000e+00> : vector<8x32xf32>
    %183 = tpu.matmul %182, %50, %cst_70 {dimension_numbers = #tpu.dot_dimension_numbers<[1], [0], [0], [1], [0, 0, 1, 1], [], []>} : vector<8x32xf32>, vector<32x32xf32>, vector<8x32xf32> -> vector<8x32xf32>
    %184 = arith.addf %183, %62 : vector<8x32xf32>
    %185 = arith.mulf %184, %40 : vector<8x32xf32>
    %186 = arith.addf %156, %185 : vector<8x32xf32>
    %cst_71 = arith.constant dense<0.000000e+00> : vector<8x32xf32>
    %187 = tpu.matmul %186, %46, %cst_71 {dimension_numbers = #tpu.dot_dimension_numbers<[1], [0], [0], [1], [0, 0, 1, 1], [], []>} : vector<8x32xf32>, vector<32x32xf32>, vector<8x32xf32> -> vector<8x32xf32>
    %188 = arith.addf %187, %54 : vector<8x32xf32>
    %189 = math.tanh %188 : vector<8x32xf32>
    %cst_72 = arith.constant dense<0.000000e+00> : vector<8x32xf32>
    %190 = tpu.matmul %189, %48, %cst_72 {dimension_numbers = #tpu.dot_dimension_numbers<[1], [0], [0], [1], [0, 0, 1, 1], [], []>} : vector<8x32xf32>, vector<32x32xf32>, vector<8x32xf32> -> vector<8x32xf32>
    %191 = arith.addf %190, %58 : vector<8x32xf32>
    %192 = math.tanh %191 : vector<8x32xf32>
    %cst_73 = arith.constant dense<0.000000e+00> : vector<8x32xf32>
    %193 = tpu.matmul %192, %50, %cst_73 {dimension_numbers = #tpu.dot_dimension_numbers<[1], [0], [0], [1], [0, 0, 1, 1], [], []>} : vector<8x32xf32>, vector<32x32xf32>, vector<8x32xf32> -> vector<8x32xf32>
    %194 = arith.addf %193, %62 : vector<8x32xf32>
    %cst_74 = arith.constant 2.000000e+00 : f32
    %195 = vector.broadcast %cst_74 : f32 to vector<8x32xf32>
    %196 = arith.mulf %195, %174 : vector<8x32xf32>
    %197 = arith.addf %164, %196 : vector<8x32xf32>
    %cst_75 = arith.constant 2.000000e+00 : f32
    %198 = vector.broadcast %cst_75 : f32 to vector<8x32xf32>
    %199 = arith.mulf %198, %184 : vector<8x32xf32>
    %200 = arith.addf %197, %199 : vector<8x32xf32>
    %201 = arith.addf %200, %194 : vector<8x32xf32>
    %202 = arith.mulf %44, %201 : vector<8x32xf32>
    %203 = arith.addf %156, %202 : vector<8x32xf32>
    %c0_76 = arith.constant 0 : index
    %c0_77 = arith.constant 0 : index
    %204 = vector.load %arg11[%c0_76, %c0_77] : memref<8x32xf32, #tpu.memory_space<vmem>>, vector<8x32xf32>
    tpu.vector_store %arg11[%c0_76, %c0_77], %203 {strides = array<i32>} : memref<8x32xf32, #tpu.memory_space<vmem>>, vector<8x32xf32>,
    %c0_78 = arith.constant 0 : index
    %c0_79 = arith.constant 0 : index
    %205 = vector.load %arg12[%c0_78, %c0_79] : memref<8x32xf32, #tpu.memory_space<vmem>>, vector<8x32xf32>
    tpu.vector_store %arg12[%c0_78, %c0_79], %32 {strides = array<i32>} : memref<8x32xf32, #tpu.memory_space<vmem>>, vector<8x32xf32>,
    %c0_80 = arith.constant 0 : index
    %c0_81 = arith.constant 0 : index
    %c0_82 = arith.constant 0 : index
    %206 = vector.load %arg10[%c0_80, %c0_81, %c0_82] : memref<1x8x32xf32, #tpu.memory_space<vmem>>, vector<1x8x32xf32>
    %207 = vector.shape_cast %206 : vector<1x8x32xf32> to vector<8x32xf32>
    %208 = vector.shape_cast %203 : vector<8x32xf32> to vector<1x8x32xf32>
    tpu.vector_store %arg10[%c0_80, %c0_81, %c0_82], %208 {strides = array<i32>} : memref<1x8x32xf32, #tpu.memory_space<vmem>>, vector<1x8x32xf32>,
    %c0_83 = arith.constant 0 : index
    %c0_84 = arith.constant 0 : index
    %209 = vector.load %arg7[%c0_83, %c0_84] : memref<32x8xf32, #tpu.memory_space<vmem>>, vector<32x8xf32>
    %cst_85 = arith.constant dense<0.000000e+00> : vector<8x8xf32>
    %210 = tpu.matmul %203, %209, %cst_85 {dimension_numbers = #tpu.dot_dimension_numbers<[1], [0], [0], [1], [0, 0, 1, 1], [], []>} : vector<8x32xf32>, vector<32x8xf32>, vector<8x8xf32> -> vector<8x8xf32>
    %c0_86 = arith.constant 0 : index
    %c0_87 = arith.constant 0 : index
    %211 = vector.load %arg8[%c0_86, %c0_87] : memref<1x8xf32, #tpu.memory_space<vmem>>, vector<1x8xf32>
    %212 = vector.broadcast %211 : vector<1x8xf32> to vector<8x8xf32>
    %213 = arith.addf %210, %212 : vector<8x8xf32>
    %c0_88 = arith.constant 0 : index
    %c0_89 = arith.constant 0 : index
    %c0_90 = arith.constant 0 : index
    %214 = vector.load %arg9[%c0_88, %c0_89, %c0_90] : memref<1x8x8xf32, #tpu.memory_space<vmem>>, vector<1x8x8xf32>
    %215 = vector.shape_cast %214 : vector<1x8x8xf32> to vector<8x8xf32>
    %216 = vector.shape_cast %213 : vector<8x8xf32> to vector<1x8x8xf32>
    tpu.vector_store %arg9[%c0_88, %c0_89, %c0_90], %216 {strides = array<i32>} : memref<1x8x8xf32, #tpu.memory_space<vmem>>, vector<1x8x8xf32>,
    return
  }
  func.func @transform_0(%arg0: i32, %arg1: i32) -> (i32, i32, i32) {
    %c0_i32 = arith.constant 0 : i32
    %c0_i32_0 = arith.constant 0 : i32
    return %arg1, %arg0, %c0_i32 : i32, i32, i32
  }
  func.func @transform_1(%arg0: i32, %arg1: i32) -> (i32, i32, i32) {
    %c0_i32 = arith.constant 0 : i32
    %c0_i32_0 = arith.constant 0 : i32
    return %arg1, %arg0, %c0_i32 : i32, i32, i32
  }
  func.func @transform_2(%arg0: i32, %arg1: i32) -> (i32, i32) {
    %c0_i32 = arith.constant 0 : i32
    %c0_i32_0 = arith.constant 0 : i32
    %c0_i32_1 = arith.constant 0 : i32
    return %c0_i32, %c0_i32_0 : i32, i32
  }
  func.func @transform_3(%arg0: i32, %arg1: i32) -> (i32, i32, i32) {
    %c0_i32 = arith.constant 0 : i32
    %c0_i32_0 = arith.constant 0 : i32
    %c0_i32_1 = arith.constant 0 : i32
    %c0_i32_2 = arith.constant 0 : i32
    return %c0_i32, %c0_i32_0, %c0_i32_1 : i32, i32, i32
  }
  func.func @transform_4(%arg0: i32, %arg1: i32) -> (i32, i32, i32) {
    %c0_i32 = arith.constant 0 : i32
    %c0_i32_0 = arith.constant 0 : i32
    %c0_i32_1 = arith.constant 0 : i32
    %c0_i32_2 = arith.constant 0 : i32
    return %c0_i32, %c0_i32_0, %c0_i32_1 : i32, i32, i32
  }
  func.func @transform_5(%arg0: i32, %arg1: i32) -> (i32, i32) {
    %c0_i32 = arith.constant 0 : i32
    %c0_i32_0 = arith.constant 0 : i32
    %c0_i32_1 = arith.constant 0 : i32
    return %c0_i32, %c0_i32_0 : i32, i32
  }
  func.func @transform_6(%arg0: i32, %arg1: i32) -> (i32, i32) {
    %c0_i32 = arith.constant 0 : i32
    %c0_i32_0 = arith.constant 0 : i32
    %c0_i32_1 = arith.constant 0 : i32
    return %c0_i32, %c0_i32_0 : i32, i32
  }
  func.func @transform_7(%arg0: i32, %arg1: i32) -> (i32, i32, i32) {
    %c0_i32 = arith.constant 0 : i32
    %c0_i32_0 = arith.constant 0 : i32
    return %arg1, %arg0, %c0_i32 : i32, i32, i32
  }
  func.func @transform_8(%arg0: i32, %arg1: i32) -> (i32, i32, i32) {
    %c0_i32 = arith.constant 0 : i32
    %c0_i32_0 = arith.constant 0 : i32
    return %arg1, %arg0, %c0_i32 : i32, i32, i32
  }
}

</mosaic_0001>

<bundles_post_ra>
// kernel: tpu_custom_call.1
= control target key start
LH: loop header
LB: loop body
LE: loop exit
PB: predicated region body
PF: predicated region fallthrough
CT: control target
= control target key end

     0   :  { %s5388_s0 = inlined_call_operand.vmem [shape: f32[8,16,128], index: 0, kind: input, shape index: {}]   ;;  %s5389_s1 = inlined_call_operand.vmem [shape: f32[8,16,1], index: 1, kind: input, shape index: {}]   ;;  %s5390_s2 = inlined_call_operand.vmem [shape: f32[32,128], index: 2, kind: input, shape index: {}]   ;;  %s5391_s3 = inlined_call_operand.hbm [shape: f32[3,32,32], index: 3, kind: input, shape index: {}]   ;;  %s5392_s4 = inlined_call_operand.vmem [shape: f32[3,1,32], index: 4, kind: input, shape index: {}]   ;;  %s5393_s5 = inlined_call_operand.vmem [shape: f32[32,8], index: 5, kind: input, shape index: {}]   ;;  %s5394_s6 = inlined_call_operand.vmem [shape: f32[1,8], index: 6, kind: input, shape index: {}]   ;;  %s5395_s7 = inlined_call_operand.vmem [shape: f32[8,16,8], index: 7, kind: output, shape index: {0}]   ;;  %s5396_s8 = inlined_call_operand.hbm [shape: f32[8,16,32], index: 8, kind: output, shape index: {1}]  }
   0x1   :  { %5403 = sst [smem:[#allocation16_spill]] %s5391_s3 }
   0x2   :  { %14 = vsyncpa [#allocation5], 0 }
   0x3   :  { %15 = vsyncpa [#allocation6], 0 }
   0x4   :  { %17 = vsyncpa [#allocation6 + $0x1], 0  ;;  %s4606_s27 = smov 0   ;;  %s4608_s28 = smov 0  }
   0x5   :  { %s4610_s29 = smov 0   ;;  %s4612_s30 = smov 0  }
   0x6   :  { %s4614_s9 = smov 0   ;;  %s4616_s10 = smov 0  }
   0x7   :  { %s4618_s11 = smov 0   ;;  %s4620_s12 = smov 0  }
   0x8 LB: > { %5404 = sst [smem:[#allocation10_spill]] %s4528_s29  ;;  %s3589_s13 = sadd.s32 4294967295, %s4548_s12   ;;  %s4548_s12 = sphi %s4620_s12, %s23_s12   ;;  %s4544_s11 = sphi %s4618_s11, %s5422_s11   ;;  %s4540_s10 = sphi %s4616_s10, %s5421_s10   ;;  %s4536_s9 = sphi %s4614_s9, %s5420_s9   ;;  %s4532_s30 = sphi %s4612_s30, %s5419_s30   ;;  %s4528_s29 = sphi %s4610_s29, %s5418_s29   ;;  %s4524_s28 = sphi %s4608_s28, %s5424_s28   ;;  %s4520_s27 = sphi %s4606_s27, %s5423_s27  }
   0x9   : > { %5405 = sst [smem:[#allocation11_spill]] %s4540_s10  ;;  %s3590_s14 = sadd.s32 4294967294, %s4548_s12  }
   0xa   : > { %5406 = sst [smem:[#allocation12_spill]] %s4544_s11  ;;  %s32_s15 = sadd.s32 1, %s4540_s10 }
   0xb   : > { %s35_s16 = sadd.s32 1, %s4544_s11  ;;  %p33_p0 = scmp.ge.s32.totalorder %s32_s15, 8 }
   0xc   : > { %s233_s17 = sadd.s32 1, %s4528_s29  ;;  %p243_p1 = scmp.ne.s32.totalorder %s4528_s29, %s4524_s28 }
   0xd   : > { %p244_p2 = scmp.eq.s32.totalorder %s3589_s13, 15  ;;  %s5426_s15 = smov (%p33_p0, %s32_s15), 0 }
   0xe   : > { %5407 = sst [smem:[#allocation13_spill]] %s5426_s15  ;;  %s5428_s16 = smov (!%p33_p0, %s35_s16), %s4544_s11 }
   0xf   : > { %s228_s18 = ssub.s32 %s4540_s10, %s5426_s15  ;;  %p4658_p3 = por %p244_p2, %p243_p1 }
  0x10   : > { %p37_p4 = scmp.ge.s32.totalorder %s5428_s16, 2  ;;  %p249_p5 = scmp.ne.s32.totalorder %s4524_s28, %s4520_s27 }
  0x11   : > { %p250_p6 = scmp.eq.s32.totalorder %s3590_s14, 15  ;;  %p3591_p7 = scmp.ge.s32.totalorder %s4548_s12, 1 }
  0x12   : > { %s5430_s16 = smov (%p37_p4, %s5428_s16), 0  ;;  %p257_p9 = scmp.lt.s32.totalorder %s4548_s12, 17 }
  0x13   : > { %5409 = sst [smem:[#allocation14_spill]] %s5430_s16  ;;  %p4667_p8 = por %p250_p6, %p249_p5 }
  0x14   : > { %s229_s21 = ssub.s32 %s4544_s11, %s5430_s16  ;;  %p4674_p10 = pnand %p3591_p7, %p257_p9 }
  0x15   : > { %s230_s22 = sor.u32 %s229_s21, %s228_s18  ;;  %p4678_p12 = scmp.eq.s32.totalorder %s3589_s13, 0 }
  0x16   : > { %p231_p11 = scmp.eq.s32.totalorder %s230_s22, 0  ;;  %p4268_p13 = pneg %p4674_p10 }
  0x17   : > { %s4550_s26 = smov [#allocation4]  }
  0x18   : > { %s4685_s25 = scalar_select %p231_p11, %s4528_s29, %s233_s17  }
  0x19   : > { %s272_s14 = sshll.u32 %s4550_s26, 4  ;;  %p4689_p0 = pnand %p4678_p12, %p4268_p13  ;;  %s273_s14 = int_to_ptr.vmem [resolvable:$true] %s272_s14 }
  0x1a   : > { %5413 = sst [smem:[#allocation15_spill]] %s4685_s25  ;;  %s4437_s13 = scalar_lea.vmem %s273_s14, 1536 }
  0x1b   : > { %p4428_p1 = pneg %p4689_p0  ;;  %p4438_p2 = scmp.ne.s32.totalorder %s273_s14, %s4437_s13 }
  0x1c   : > { %p4445_p6 = scmp.lt.s32.totalorder %s273_s14, %s273_s14  ;;  %p4446_p7 = scmp.lt.s32.totalorder %s4437_s13, %s4437_s13 }
  0x1d   : > { %p4440_p4 = pnand %p4438_p2, %p4428_p1 }
  0x1e   : > { %p4447_p9 = por %p4446_p7, %p4445_p6 }
  0x1f   : > { %p4441_p5 = pneg %p4440_p4 }
  0x21   : > { %p4448_p11 = pnand %p4447_p9, %p4441_p5 }
  0x23   : > { %4451 = shalt.err (!%p4448_p11)
}
  0x24   : > { %s4551_s17 = smov 128   ;;  %s4552_s21 = smov 8  }
  0x25   : > { %s5415_s3 = sld [smem:[#allocation16_spill]] }
  0x27   : > { %319 = sbr.rel (%p4674_p10) target bundleno = 11124 (0x2b74), region = 48 }
  0x2b   : > { %4271 = dma.hbm_to_vmem [thread:$0]  (!%p4689_p0), %s5415_s3, 1536, %s273_s14, [#allocation5], %s4551_s17, %s4551_s17, %s4552_s21  }
  0x2c   : > { %4511 = dma.done.wait (%p4678_p12), [#allocation5], 1536  }
  0x2d   : > { %4513 = vsyncadd (%p4678_p12), [#allocation5], 4294965760  ;;  %s5399_s18 = sand.u32 1, %s4524_s28   ;;  %p372_p13 = scmp.lt.s32.totalorder %s4532_s30, 7 }
  0x2e   : > { %s4710_s13 = sshll.u32 %s5399_s18, 3  ;;  %p374_p0 = scmp.lt.s32.totalorder %s4536_s9, 1 }
  0x2f   : > { %s373_s23 = scalar_select %p372_p13, %s4532_s30, 7 }
  0x30   : > { %s375_s14 = scalar_select %p374_p0, %s4536_s9, 1 }
  0x31   : > { %s3597_s17 = sshll.u32 %s373_s23, 1  ;;  %s371_s29 = scalar_lea.vmem [#allocation7], %s4710_s13 }
  0x32   : > { %s377_s21 = sadd.s32 %s3597_s17, %s375_s14  ;;  %p3603_p10 = scmp.ne.s32.totalorder %s4532_s30, 0 }
  0x33   : > { %s4715_s22 = sshll.u32 %s377_s21, 3 }
  0x34   : > { %s379_s3 = scalar_lea.vmem %s5388_s0, %s4715_s22  ;;  %s387_s18 = scalar_lea.vmem %s5389_s1, %s4715_s22 }
  0x35   : > { %s395_s25 = scalar_lea.vmem %s5395_s7, %s4715_s22  ;;  %399 = sbr.rel (%p3603_p10) target bundleno = 60 (0x3c), region = 56 }
  0x3a   : > { %vm400_vm0 = vcmask 261120   ;;  %v4553_v0 = vmov 0.0  }
  0x3b   : > { %401 = vst.msk [vmem:[#allocation2] sm:$0xff] %vm400_vm0, %v4553_v0  ;;  %402 = vst.msk [vmem:[#allocation3] sm:$0xff] %vm400_vm0, %v4553_v0 }
  0x3c PF: > { %v409_v1 = vld [vmem:[%s5390_s2 + $0x18] sm:$0xff]  ;;  %v4554_v2 = vmov 0.0   ;;  %v408_v3 = vld [vmem:[%s5390_s2 + $0x10] sm:$0xff]  ;;  %vm4555_vm1 = vmmov 0   ;;  %v407_v4 = vld [vmem:[%s5390_s2 + $0x8] sm:$0xff]  ;;  %vm410_vm2 = vcmask 261120  }
  0x3d   : > { %3844 = vmatprep.subr.mxu0 %v4554_v2  ;;  %3852 = vmatprep.mubr.msk.f32.mxu0 %vm4555_vm1, %v4554_v2  ;;  %v406_v5 = vld [vmem:[%s5390_s2] sm:$0xff]  ;;  %s4556_s23 = smov 64   ;;  %s4557_s14 = smov 32   ;;  %v4767_v23 = vld [vmem:[#allocation4 + $0x18] sm:$0xff]  ;;  %v4773_v25 = vld [vmem:[#allocation4 + $0x8] sm:$0xff]  ;;  %v4558_v45 = vmov 0  }
  0x3e   : > { %3845 = vmatpush3.msra.mxu0 %v409_v1  ;;  %3855 = vmatprep.subr.mxu1 %v4554_v2  ;;  %v405_v7 = vld [vmem:[%s379_s3] sm:$0xff]  ;;  %v4777_v26 = vld [vmem:[#allocation4] sm:$0xff]  ;;  %v4791_v31 = vld [vmem:[#allocation4 + $0x38] sm:$0xff]  ;;  %s4559_s24 = smov 96   ;;  %s3650_s16 = sshll.u32 %s4532_s30, 1 }
  0x3f   : > { %3846 = vmatprep.subr.mxu0 %v4554_v2  ;;  %3863 = vmatprep.mubr.msk.f32.mxu1 %vm4555_vm1, %v4554_v2  ;;  %v4769_v24 = vld [vmem:[#allocation4 + $0x10] sm:$0xff]  ;;  %v4797_v33 = vld [vmem:[#allocation4 + $0x28] sm:$0xff]  ;;  %v4801_v34 = vld [vmem:[#allocation4 + $0x20] sm:$0xff]  ;;  %s3445_s11 = sshll.u32 %s371_s29, 4  ;;  %s5416_s21 = sand.u32 1, %s4524_s28   ;;  %s3446_s11 = int_to_ptr.vmem [resolvable:$true] %s3445_s11 }
  0x40   : > { %3847 = vmatpush3.msra.mxu0 %v408_v3  ;;  %3856 = vmatpush3.msra.mxu1 %v4767_v23  ;;  %v4793_v32 = vld [vmem:[#allocation4 + $0x30] sm:$0xff]  ;;  %v4824_v40 = vld [vmem:[#allocation4 + $0x58] sm:$0xff]  ;;  %v4830_v42 = vld [vmem:[#allocation4 + $0x48] sm:$0xff]  ;;  %s3427_s26 = scalar_lea.sflag [#allocation6], %s5416_s21  ;;  %s4560_s3 = smov [#allocation7]  }
  0x41   : > { %3848 = vmatprep.subr.mxu0 %v4554_v2  ;;  %3857 = vmatprep.subr.mxu1 %v4554_v2  ;;  %v4810_v35 = vld [vmem:[%s5392_s4] ss:$0 sm:$0xff]  ;;  %v4834_v43 = vld [vmem:[#allocation4 + $0x40] sm:$0xff]  ;;  %v4848_v47 = vld [vmem:[%s5392_s4 + $0x1] ss:$0 sm:$0xff]  ;;  %s4456_s15 = sshll.u32 %s4560_s3, 4  ;;  %s4457_s15 = int_to_ptr.vmem [resolvable:$false] %s4456_s15 }
  0x42   : > { %3849 = vmatpush3.msra.mxu0 %v407_v4  ;;  %v403_v6 = vld [vmem:[#allocation2] sm:$0xff]  ;;  %v404_v12 = vld [vmem:[#allocation3] sm:$0xff]  ;;  %3858 = vmatpush3.msra.mxu1 %v4769_v24  ;;  %s4458_s30 = scalar_lea.vmem %s4457_s15, 256  ;;  %p4459_p4 = scmp.lt.s32.totalorder %s3446_s11, %s4457_s15 }
  0x43   : > { %3850 = vmatprep.subr.mxu0 %v4554_v2  ;;  %3859 = vmatprep.subr.mxu1 %v4554_v2  ;;  %v4826_v41 = vld [vmem:[#allocation4 + $0x50] sm:$0xff] }
  0x44   : > { %3851 = vmatpush3.msra.mxu0 %v406_v5  ;;  %3860 = vmatpush3.msra.mxu1 %v4773_v25  ;;  %v513_v44 = vld [vmem:[%s387_s18] sm:$0xff] }
  0x45   : > { %3853 = vmatmul.mubr.msk.f32.vlgmr.msra.gmra.mxu0 %vm410_vm2, %v403_v6  ;;  %3866 = vmatprep.subr.mxu0 %v4554_v2  ;;  %v514_v46 = vmul.f32 0.33333334, %v513_v44  ;;  %v4867_v53 = vld [vmem:[%s5392_s4 + $0x2] ss:$0 sm:$0xff] }
  0x46   : > { %3874 = vmatprep.mubr.msk.f32.mxu0 %vm4555_vm1, %v4554_v2  ;;  %3861 = vmatprep.subr.mxu1 %v4554_v2 }
  0x47   : > { %3862 = vmatpush3.msra.mxu1 %v4777_v26  ;;  %3867 = vmatpush3.msra.mxu0 %v4791_v31 }
  0x48   : > { %3877 = vmatprep.subr.mxu1 %v4554_v2  ;;  %3868 = vmatprep.subr.mxu0 %v4554_v2 }
  0x49   : > { %3869 = vmatpush3.msra.mxu0 %v4793_v32  ;;  %4353 = vset.pattern.permute.xlu1 %v4558_v45 }
  0x4a   : > { %3870 = vmatprep.subr.mxu0 %v4554_v2  ;;  %4354 = vset.pattern.permute.xlu0 %v4558_v45 }
  0x4b   : > { %3871 = vmatpush3.msra.mxu0 %v4797_v33 }
  0x4c   : > { %3872 = vmatprep.subr.mxu0 %v4554_v2 }
  0x4d   : > { %3873 = vmatpush3.msra.mxu0 %v4801_v34 }
  0x4e   : > { %3888 = vmatprep.subr.mxu0 %v4554_v2 }
 0x105   : > { %v480_v8 = vpop.f32.mrf.mxu0 }
 0x106   : > { %v484_v9 = vadd.f32 %v480_v8, %v405_v7 }
 0x107   : > { %v3854_v10 = vpop.f32.mrf.mxu0 }
 0x108   : > { %4355 = vtanh.f32 %v484_v9  ;;  %v3605_v13 = vmul.f32 -1.442695, %v484_v9 }
 0x10a   : > { %4357 = vpow2.f32 %v3605_v13 }
 0x115   : > { %v4356_v11 = vpop.eup %4355 }
 0x116   : > { %498 = vrot.lane.b32.xlu0 %v4356_v11, %s4556_s23 }
 0x117   : > { %v4358_v14 = vpop.eup %4357 }
 0x118   : > { %v488_v15 = vadd.f32 1.0, %v4358_v14 }
 0x11a   : > { %493 = vrot.lane.b32.xlu0 %v404_v12, %s4557_s14  ;;  %4359 = vrcp.f32 %v488_v15 }
 0x127   : > { %v4360_v16 = vpop.eup %4359 }
 0x188   : > { %v499_v17 = vpop.permute.xlu0 %498 }
 0x189   : > { %v501_v18 = vmul.f32 %v4360_v16, %v499_v17 }
 0x18b   : > { %503 = vrot.lane.b32.xlu1 %v501_v18, %s4557_s14 }
 0x18c   : > { %v494_v19 = vpop.permute.xlu0 %493 }
 0x18d   : > { %v496_v20 = vmul.f32 %v4360_v16, %v494_v19 }
 0x1fd   : > { %v504_v21 = vpop.permute.xlu1 %503 }
 0x1fe   : > { %v4764_v22 = vadd.f32 %v504_v21, %v496_v20 }
 0x200   : > { %4361 = vtanh.f32 %v4764_v22 }
 0x20d   : > { %v4362_v27 = vpop.eup %4361 }
 0x20e   : > { %509 = vrot.lane.b32.xlu1 %v4362_v27, %s4556_s23  ;;  %s4452_s23 = scalar_lea.vmem %s3446_s11, 128 }
 0x20f   : > { %p4453_p12 = scmp.ne.s32.totalorder %s3446_s11, %s4452_s23  ;;  %p4460_p5 = scmp.lt.s32.totalorder %s4458_s30, %s4452_s23 }
 0x211   : > { %p4454_p1 = pnand %p4453_p12, %p4658_p3  ;;  %p4461_p6 = por %p4460_p5, %p4459_p4 }
 0x212   : > { %517 = vperm.xlu1 %4353, %v514_v46  }
 0x213   : > { %p4455_p2 = pneg %p4454_p1 }
 0x215   : > { %p4462_p7 = pnand %p4461_p6, %p4455_p2 }
 0x280   : > { %v510_v28 = vpop.permute.xlu1 %509 }
 0x281   : > { %v4784_v29 = vmul.f32 %v4360_v16, %v510_v28 }
 0x283   : > { %560 = vrot.lane.b32.xlu0 %v4784_v29, %s4557_s14 }
 0x28d   : > { %v4862_v52 = vpop.permute.xlu1 %517 }
 0x28e   : > { %v4870_v54 = vmul.f32 0.5, %v4862_v52 }
 0x2f5   : > { %v561_v30 = vpop.permute.xlu0 %560 }
 0x2f6   : > { %3864 = vmatmul.mubr.msk.f32.vlgmr.msra.gmra.mxu1 %vm410_vm2, %v561_v30 }
 0x2f7   : > { %3885 = vmatprep.mubr.msk.f32.mxu1 %vm4555_vm1, %v4554_v2  ;;  %3878 = vmatpush3.msra.mxu1 %v4824_v40 }
 0x2f8   : > { %3879 = vmatprep.subr.mxu1 %v4554_v2 }
 0x2f9   : > { %3880 = vmatpush3.msra.mxu1 %v4826_v41 }
 0x2fa   : > { %3881 = vmatprep.subr.mxu1 %v4554_v2 }
 0x2fb   : > { %3882 = vmatpush3.msra.mxu1 %v4830_v42 }
 0x2fc   : > { %3883 = vmatprep.subr.mxu1 %v4554_v2 }
 0x2fd   : > { %3884 = vmatpush3.msra.mxu1 %v4834_v43 }
 0x2fe   : > { %3899 = vmatprep.subr.mxu1 %v4554_v2 }
 0x3b6   : > { %v630_v36 = vpop.f32.mrf.mxu1 }
 0x3b7   : > { %v631_v37 = vadd.f32 %v4810_v35, %v630_v36 }
 0x3b8   : > { %v3865_v38 = vpop.f32.mrf.mxu1 }
 0x3b9   : > { %4363 = vtanh.f32 %v631_v37 }
 0x3c6   : > { %v4364_v39 = vpop.eup %4363 }
 0x3c7   : > { %3875 = vmatmul.mubr.msk.f32.vlgmr.msra.gmra.mxu0 %vm410_vm2, %v4364_v39 }
 0x3c8   : > { %3889 = vmatpush3.msra.mxu0 %v4767_v23  ;;  %3896 = vmatprep.mubr.msk.f32.mxu0 %vm4555_vm1, %v4554_v2 }
 0x3c9   : > { %3890 = vmatprep.subr.mxu0 %v4554_v2 }
 0x3ca   : > { %3891 = vmatpush3.msra.mxu0 %v4769_v24 }
 0x3cb   : > { %3892 = vmatprep.subr.mxu0 %v4554_v2 }
 0x3cc   : > { %3893 = vmatpush3.msra.mxu0 %v4773_v25 }
 0x3cd   : > { %3894 = vmatprep.subr.mxu0 %v4554_v2 }
 0x3ce   : > { %3895 = vmatpush3.msra.mxu0 %v4777_v26 }
 0x3cf   : > { %3910 = vmatprep.subr.mxu0 %v4554_v2 }
 0x487   : > { %v704_v48 = vpop.f32.mrf.mxu0 }
 0x488   : > { %v705_v49 = vadd.f32 %v4848_v47, %v704_v48 }
 0x489   : > { %v3876_v50 = vpop.f32.mrf.mxu0 }
 0x48a   : > { %4365 = vtanh.f32 %v705_v49 }
 0x497   : > { %v4366_v51 = vpop.eup %4365 }
 0x498   : > { %3886 = vmatmul.mubr.msk.f32.vlgmr.msra.gmra.mxu1 %vm410_vm2, %v4366_v51 }
 0x499   : > { %3900 = vmatpush3.msra.mxu1 %v4791_v31  ;;  %3907 = vmatprep.mubr.msk.f32.mxu1 %vm4555_vm1, %v4554_v2 }
 0x49a   : > { %3901 = vmatprep.subr.mxu1 %v4554_v2 }
 0x49b   : > { %3902 = vmatpush3.msra.mxu1 %v4793_v32 }
 0x49c   : > { %3903 = vmatprep.subr.mxu1 %v4554_v2 }
 0x49d   : > { %3904 = vmatpush3.msra.mxu1 %v4797_v33 }
 0x49e   : > { %3905 = vmatprep.subr.mxu1 %v4554_v2 }
 0x49f   : > { %3906 = vmatpush3.msra.mxu1 %v4801_v34 }
 0x4a0   : > { %3921 = vmatprep.subr.mxu1 %v4554_v2 }
 0x558   : > { %v778_v55 = vpop.f32.mrf.mxu1 }
 0x559   : > { %v4873_v56 = vadd.f32 %v4867_v53, %v778_v55 }
 0x55a   : > { %v3887_v57 = vpop.f32.mrf.mxu1 }
 0x55b   : > { %v782_v58 = vmul.f32 %v4873_v56, %v4870_v54 }
 0x55d   : > { %784 = vrot.lane.b32.xlu0 %v782_v58, %s4559_s24 }
 0x5cf   : > { %v785_v59 = vpop.permute.xlu0 %784 }
 0x5d0   : > { %v787_v60 = vadd.f32 %v785_v59, %v4784_v29 }
 0x5d2   : > { %789 = vrot.lane.b32.xlu1 %v787_v60, %s4557_s14 }
 0x644   : > { %v790_v61 = vpop.permute.xlu1 %789 }
 0x645   : > { %3897 = vmatmul.mubr.msk.f32.vlgmr.msra.gmra.mxu0 %vm410_vm2, %v790_v61 }
 0x646   : > { %3911 = vmatpush3.msra.mxu0 %v4824_v40  ;;  %3918 = vmatprep.mubr.msk.f32.mxu0 %vm4555_vm1, %v4554_v2 }
 0x647   : > { %3912 = vmatprep.subr.mxu0 %v4554_v2 }
 0x648   : > { %3913 = vmatpush3.msra.mxu0 %v4826_v41 }
 0x649   : > { %3914 = vmatprep.subr.mxu0 %v4554_v2 }
 0x64a   : > { %3915 = vmatpush3.msra.mxu0 %v4830_v42 }
 0x64b   : > { %3916 = vmatprep.subr.mxu0 %v4554_v2 }
 0x64c   : > { %3917 = vmatpush3.msra.mxu0 %v4834_v43 }
 0x64d   : > { %3932 = vmatprep.subr.mxu0 %v4554_v2 }
 0x705   : > { %v859_v62 = vpop.f32.mrf.mxu0 }
 0x706   : > { %v860_v63 = vadd.f32 %v4810_v35, %v859_v62 }
 0x707   : > { %v3898_v0 = vpop.f32.mrf.mxu0 }
 0x708   : > { %4367 = vtanh.f32 %v860_v63  ;;  %v4998_v0 = vmul.f32 0.16666667, %v4862_v52 }
 0x715   : > { %v4368_v1 = vpop.eup %4367 }
 0x716   : > { %3908 = vmatmul.mubr.msk.f32.vlgmr.msra.gmra.mxu1 %vm410_vm2, %v4368_v1 }
 0x717   : > { %3922 = vmatpush3.msra.mxu1 %v4767_v23  ;;  %3929 = vmatprep.mubr.msk.f32.mxu1 %vm4555_vm1, %v4554_v2 }
 0x718   : > { %3923 = vmatprep.subr.mxu1 %v4554_v2 }
 0x719   : > { %3924 = vmatpush3.msra.mxu1 %v4769_v24 }
 0x71a   : > { %3925 = vmatprep.subr.mxu1 %v4554_v2 }
 0x71b   : > { %3926 = vmatpush3.msra.mxu1 %v4773_v25 }
 0x71c   : > { %3927 = vmatprep.subr.mxu1 %v4554_v2 }
 0x71d   : > { %3928 = vmatpush3.msra.mxu1 %v4777_v26 }
 0x71e   : > { %3943 = vmatprep.subr.mxu1 %v4554_v2 }
 0x7d6   : > { %v933_v3 = vpop.f32.mrf.mxu1 }
 0x7d7   : > { %v934_v4 = vadd.f32 %v4848_v47, %v933_v3 }
 0x7d8   : > { %v3909_v5 = vpop.f32.mrf.mxu1 }
 0x7d9   : > { %4369 = vtanh.f32 %v934_v4 }
 0x7e6   : > { %v4370_v6 = vpop.eup %4369 }
 0x7e7   : > { %3919 = vmatmul.mubr.msk.f32.vlgmr.msra.gmra.mxu0 %vm410_vm2, %v4370_v6 }
 0x7e8   : > { %3933 = vmatpush3.msra.mxu0 %v4791_v31  ;;  %3940 = vmatprep.mubr.msk.f32.mxu0 %vm4555_vm1, %v4554_v2 }
 0x7e9   : > { %3934 = vmatprep.subr.mxu0 %v4554_v2 }
 0x7ea   : > { %3935 = vmatpush3.msra.mxu0 %v4793_v32 }
 0x7eb   : > { %3936 = vmatprep.subr.mxu0 %v4554_v2 }
 0x7ec   : > { %3937 = vmatpush3.msra.mxu0 %v4797_v33 }
 0x7ed   : > { %3938 = vmatprep.subr.mxu0 %v4554_v2 }
 0x7ee   : > { %3939 = vmatpush3.msra.mxu0 %v4801_v34 }
 0x7ef   : > { %3954 = vmatprep.subr.mxu0 %v4554_v2 }
 0x8a7   : > { %v1007_v7 = vpop.f32.mrf.mxu0 }
 0x8a8   : > { %v1008_v8 = vadd.f32 %v4867_v53, %v1007_v7 }
 0x8a9   : > { %v3920_v9 = vpop.f32.mrf.mxu0 }
 0x8aa   : > { %v1011_v10 = vmul.f32 %v1008_v8, %v4870_v54  ;;  %v1469_v27 = vmul.f32 2.0, %v1008_v8 }
 0x8ac   : > { %1013 = vrot.lane.b32.xlu0 %v1011_v10, %s4559_s24  ;;  %v1470_v37 = vadd.f32 %v1469_v27, %v4873_v56 }
 0x91e   : > { %v1014_v11 = vpop.permute.xlu0 %1013 }
 0x91f   : > { %v1016_v12 = vadd.f32 %v1014_v11, %v4784_v29 }
 0x921   : > { %1018 = vrot.lane.b32.xlu1 %v1016_v12, %s4557_s14 }
 0x993   : > { %v1019_v13 = vpop.permute.xlu1 %1018 }
 0x994   : > { %3930 = vmatmul.mubr.msk.f32.vlgmr.msra.gmra.mxu1 %vm410_vm2, %v1019_v13 }
 0x995   : > { %3944 = vmatpush3.msra.mxu1 %v4824_v40  ;;  %3951 = vmatprep.mubr.msk.f32.mxu1 %vm4555_vm1, %v4554_v2 }
 0x996   : > { %3945 = vmatprep.subr.mxu1 %v4554_v2 }
 0x997   : > { %3946 = vmatpush3.msra.mxu1 %v4826_v41 }
 0x998   : > { %3947 = vmatprep.subr.mxu1 %v4554_v2 }
 0x999   : > { %3948 = vmatpush3.msra.mxu1 %v4830_v42 }
 0x99a   : > { %3949 = vmatprep.subr.mxu1 %v4554_v2 }
 0x99b   : > { %3950 = vmatpush3.msra.mxu1 %v4834_v43 }
 0x99c   : > { %3965 = vmatprep.subr.mxu1 %v4554_v2 }
 0xa54   : > { %v1088_v14 = vpop.f32.mrf.mxu1 }
 0xa55   : > { %v1089_v15 = vadd.f32 %v4810_v35, %v1088_v14 }
 0xa56   : > { %v3931_v16 = vpop.f32.mrf.mxu1 }
 0xa57   : > { %4371 = vtanh.f32 %v1089_v15 }
 0xa64   : > { %v4372_v17 = vpop.eup %4371 }
 0xa65   : > { %3941 = vmatmul.mubr.msk.f32.vlgmr.msra.gmra.mxu0 %vm410_vm2, %v4372_v17 }
 0xa66   : > { %3955 = vmatpush3.msra.mxu0 %v4767_v23  ;;  %3962 = vmatprep.mubr.msk.f32.mxu0 %vm4555_vm1, %v4554_v2 }
 0xa67   : > { %3956 = vmatprep.subr.mxu0 %v4554_v2 }
 0xa68   : > { %3957 = vmatpush3.msra.mxu0 %v4769_v24 }
 0xa69   : > { %3958 = vmatprep.subr.mxu0 %v4554_v2 }
 0xa6a   : > { %3959 = vmatpush3.msra.mxu0 %v4773_v25 }
 0xa6b   : > { %3960 = vmatprep.subr.mxu0 %v4554_v2 }
 0xa6c   : > { %3961 = vmatpush3.msra.mxu0 %v4777_v26 }
 0xa6d   : > { %3976 = vmatprep.subr.mxu0 %v4554_v2 }
 0xb25   : > { %v1162_v18 = vpop.f32.mrf.mxu0 }
 0xb26   : > { %v1163_v19 = vadd.f32 %v4848_v47, %v1162_v18 }
 0xb27   : > { %v3942_v20 = vpop.f32.mrf.mxu0 }
 0xb28   : > { %4373 = vtanh.f32 %v1163_v19 }
 0xb35   : > { %v4374_v21 = vpop.eup %4373 }
 0xb36   : > { %3952 = vmatmul.mubr.msk.f32.vlgmr.msra.gmra.mxu1 %vm410_vm2, %v4374_v21 }
 0xb37   : > { %3966 = vmatpush3.msra.mxu1 %v4791_v31  ;;  %3973 = vmatprep.mubr.msk.f32.mxu1 %vm4555_vm1, %v4554_v2 }
 0xb38   : > { %3967 = vmatprep.subr.mxu1 %v4554_v2 }
 0xb39   : > { %3968 = vmatpush3.msra.mxu1 %v4793_v32 }
 0xb3a   : > { %3969 = vmatprep.subr.mxu1 %v4554_v2 }
 0xb3b   : > { %3970 = vmatpush3.msra.mxu1 %v4797_v33 }
 0xb3c   : > { %3971 = vmatprep.subr.mxu1 %v4554_v2 }
 0xb3d   : > { %3972 = vmatpush3.msra.mxu1 %v4801_v34 }
 0xb3e   : > { %3987 = vmatprep.subr.mxu1 %v4554_v2 }
 0xbf6   : > { %v1236_v28 = vpop.f32.mrf.mxu1 }
 0xbf7   : > { %v1237_v30 = vadd.f32 %v4867_v53, %v1236_v28 }
 0xbf8   : > { %v3953_v36 = vpop.f32.mrf.mxu1 }
 0xbf9   : > { %v1240_v38 = vmul.f32 %v1237_v30, %v4862_v52  ;;  %v1471_v39 = vmul.f32 2.0, %v1237_v30 }
 0xbfb   : > { %1242 = vrot.lane.b32.xlu0 %v1240_v38, %s4559_s24  ;;  %v1472_v44 = vadd.f32 %v1471_v39, %v1470_v37 }
 0xc6d   : > { %v1243_v45 = vpop.permute.xlu0 %1242 }
 0xc6e   : > { %v1245_v46 = vadd.f32 %v1243_v45, %v4784_v29 }
 0xc70   : > { %1247 = vrot.lane.b32.xlu1 %v1245_v46, %s4557_s14 }
 0xce2   : > { %v1248_v48 = vpop.permute.xlu1 %1247 }
 0xce3   : > { %3963 = vmatmul.mubr.msk.f32.vlgmr.msra.gmra.mxu0 %vm410_vm2, %v1248_v48 }
 0xce4   : > { %3977 = vmatpush3.msra.mxu0 %v4824_v40  ;;  %3984 = vmatprep.mubr.msk.f32.mxu0 %vm4555_vm1, %v4554_v2 }
 0xce5   : > { %3978 = vmatprep.subr.mxu0 %v4554_v2 }
 0xce6   : > { %3979 = vmatpush3.msra.mxu0 %v4826_v41 }
 0xce7   : > { %3980 = vmatprep.subr.mxu0 %v4554_v2 }
 0xce8   : > { %3981 = vmatpush3.msra.mxu0 %v4830_v42 }
 0xce9   : > { %3982 = vmatprep.subr.mxu0 %v4554_v2 }
 0xcea   : > { %3983 = vmatpush3.msra.mxu0 %v4834_v43 }
 0xceb   : > { %3998 = vmatprep.subr.mxu0 %v4554_v2 }
 0xda3   : > { %v1317_v49 = vpop.f32.mrf.mxu0 }
 0xda4   : > { %v1318_v50 = vadd.f32 %v4810_v35, %v1317_v49 }
 0xda5   : > { %v3964_v51 = vpop.f32.mrf.mxu0 }
 0xda6   : > { %4375 = vtanh.f32 %v1318_v50 }
 0xdb3   : > { %v4376_v55 = vpop.eup %4375 }
 0xdb4   : > { %3974 = vmatmul.mubr.msk.f32.vlgmr.msra.gmra.mxu1 %vm410_vm2, %v4376_v55 }
 0xdb5   : > { %3988 = vmatpush3.msra.mxu1 %v4767_v23  ;;  %3995 = vmatprep.mubr.msk.f32.mxu1 %vm4555_vm1, %v4554_v2 }
 0xdb6   : > { %3989 = vmatprep.subr.mxu1 %v4554_v2 }
 0xdb7   : > { %3990 = vmatpush3.msra.mxu1 %v4769_v24 }
 0xdb8   : > { %3991 = vmatprep.subr.mxu1 %v4554_v2 }
 0xdb9   : > { %3992 = vmatpush3.msra.mxu1 %v4773_v25 }
 0xdba   : > { %3993 = vmatprep.subr.mxu1 %v4554_v2 }
 0xdbb   : > { %3994 = vmatpush3.msra.mxu1 %v4777_v26 }
 0xdbc   : > { %4009 = vmatprep.subr.mxu1 %v4554_v2 }
 0xe74   : > { %v1391_v56 = vpop.f32.mrf.mxu1 }
 0xe75   : > { %v1392_v57 = vadd.f32 %v4848_v47, %v1391_v56 }
 0xe76   : > { %v3975_v58 = vpop.f32.mrf.mxu1 }
 0xe77   : > { %4377 = vtanh.f32 %v1392_v57 }
 0xe84   : > { %v4378_v59 = vpop.eup %4377 }
 0xe85   : > { %3985 = vmatmul.mubr.msk.f32.vlgmr.msra.gmra.mxu0 %vm410_vm2, %v4378_v59 }
 0xe86   : > { %3999 = vmatpush3.msra.mxu0 %v4791_v31  ;;  %4006 = vmatprep.mubr.msk.f32.mxu0 %vm4555_vm1, %v4554_v2 }
 0xe87   : > { %4000 = vmatprep.subr.mxu0 %v4554_v2 }
 0xe88   : > { %4001 = vmatpush3.msra.mxu0 %v4793_v32 }
 0xe89   : > { %4002 = vmatprep.subr.mxu0 %v4554_v2 }
 0xe8a   : > { %4003 = vmatpush3.msra.mxu0 %v4797_v33 }
 0xe8b   : > { %4004 = vmatprep.subr.mxu0 %v4554_v2 }
 0xe8c   : > { %4005 = vmatpush3.msra.mxu0 %v4801_v34 }
 0xe8d   : > { %4020 = vmatprep.subr.mxu0 %v4554_v2 }
 0xf45   : > { %v1465_v60 = vpop.f32.mrf.mxu0 }
 0xf46   : > { %v1466_v61 = vadd.f32 %v4867_v53, %v1465_v60 }
 0xf47   : > { %v3986_v62 = vpop.f32.mrf.mxu0 }
 0xf48   : > { %v1473_v63 = vadd.f32 %v1472_v44, %v1466_v61 }
 0xf4a   : > { %v1474_v1 = vmul.f32 %v1473_v63, %v4998_v0 }
 0xf4c   : > { %1476 = vrot.lane.b32.xlu0 %v1474_v1, %s4559_s24 }
 0xfbe   : > { %v1477_v3 = vpop.permute.xlu0 %1476 }
 0xfbf   : > { %v5003_v4 = vadd.f32 %v1477_v3, %v4784_v29 }
 0xfc1   : > { %1481 = vrot.lane.b32.xlu1 %v5003_v4, %s4557_s14 }
0x1033   : > { %v1482_v5 = vpop.permute.xlu1 %1481 }
0x1034   : > { %3996 = vmatmul.mubr.msk.f32.vlgmr.msra.gmra.mxu1 %vm410_vm2, %v1482_v5 }
0x1035   : > { %4010 = vmatpush3.msra.mxu1 %v4824_v40  ;;  %4017 = vmatprep.mubr.msk.f32.mxu1 %vm4555_vm1, %v4554_v2 }
0x1036   : > { %4011 = vmatprep.subr.mxu1 %v4554_v2 }
0x1037   : > { %4012 = vmatpush3.msra.mxu1 %v4826_v41 }
0x1038   : > { %4013 = vmatprep.subr.mxu1 %v4554_v2 }
0x1039   : > { %4014 = vmatpush3.msra.mxu1 %v4830_v42 }
0x103a   : > { %4015 = vmatprep.subr.mxu1 %v4554_v2 }
0x103b   : > { %4016 = vmatpush3.msra.mxu1 %v4834_v43 }
0x103c   : > { %4031 = vmatprep.subr.mxu1 %v4554_v2 }
0x10f4   : > { %v1551_v29 = vpop.f32.mrf.mxu1 }
0x10f5   : > { %v1552_v6 = vadd.f32 %v4810_v35, %v1551_v29 }
0x10f6   : > { %v3997_v7 = vpop.f32.mrf.mxu1 }
0x10f7   : > { %4379 = vtanh.f32 %v1552_v6 }
0x1104   : > { %v4380_v8 = vpop.eup %4379 }
0x1105   : > { %4007 = vmatmul.mubr.msk.f32.vlgmr.msra.gmra.mxu0 %vm410_vm2, %v4380_v8 }
0x1106   : > { %4021 = vmatpush3.msra.mxu0 %v4767_v23  ;;  %4028 = vmatprep.mubr.msk.f32.mxu0 %vm4555_vm1, %v4554_v2 }
0x1107   : > { %4022 = vmatprep.subr.mxu0 %v4554_v2 }
0x1108   : > { %4023 = vmatpush3.msra.mxu0 %v4769_v24 }
0x1109   : > { %4024 = vmatprep.subr.mxu0 %v4554_v2 }
0x110a   : > { %4025 = vmatpush3.msra.mxu0 %v4773_v25 }
0x110b   : > { %4026 = vmatprep.subr.mxu0 %v4554_v2 }
0x110c   : > { %4027 = vmatpush3.msra.mxu0 %v4777_v26 }
0x110d   : > { %4042 = vmatprep.subr.mxu0 %v4554_v2 }
0x11c5   : > { %v1625_v9 = vpop.f32.mrf.mxu0 }
0x11c6   : > { %v1626_v10 = vadd.f32 %v4848_v47, %v1625_v9 }
0x11c7   : > { %v4008_v11 = vpop.f32.mrf.mxu0 }
0x11c8   : > { %4381 = vtanh.f32 %v1626_v10 }
0x11d5   : > { %v4382_v12 = vpop.eup %4381 }
0x11d6   : > { %4018 = vmatmul.mubr.msk.f32.vlgmr.msra.gmra.mxu1 %vm410_vm2, %v4382_v12 }
0x11d7   : > { %4032 = vmatpush3.msra.mxu1 %v4791_v31  ;;  %4039 = vmatprep.mubr.msk.f32.mxu1 %vm4555_vm1, %v4554_v2 }
0x11d8   : > { %4033 = vmatprep.subr.mxu1 %v4554_v2 }
0x11d9   : > { %4034 = vmatpush3.msra.mxu1 %v4793_v32 }
0x11da   : > { %4035 = vmatprep.subr.mxu1 %v4554_v2 }
0x11db   : > { %4036 = vmatpush3.msra.mxu1 %v4797_v33 }
0x11dc   : > { %4037 = vmatprep.subr.mxu1 %v4554_v2 }
0x11dd   : > { %4038 = vmatpush3.msra.mxu1 %v4801_v34 }
0x11de   : > { %4053 = vmatprep.subr.mxu1 %v4554_v2 }
0x1296   : > { %v1699_v13 = vpop.f32.mrf.mxu1 }
0x1297   : > { %v5043_v14 = vadd.f32 %v4867_v53, %v1699_v13 }
0x1298   : > { %v4019_v15 = vpop.f32.mrf.mxu1 }
0x1299   : > { %v1703_v16 = vmul.f32 %v5043_v14, %v4870_v54 }
0x129b   : > { %1705 = vrot.lane.b32.xlu0 %v1703_v16, %s4559_s24 }
0x130d   : > { %v1706_v17 = vpop.permute.xlu0 %1705 }
0x130e   : > { %v1708_v18 = vadd.f32 %v1706_v17, %v5003_v4 }
0x1310   : > { %1710 = vrot.lane.b32.xlu1 %v1708_v18, %s4557_s14 }
0x1382   : > { %v1711_v19 = vpop.permute.xlu1 %1710 }
0x1383   : > { %4029 = vmatmul.mubr.msk.f32.vlgmr.msra.gmra.mxu0 %vm410_vm2, %v1711_v19 }
0x1384   : > { %4043 = vmatpush3.msra.mxu0 %v4824_v40  ;;  %4050 = vmatprep.mubr.msk.f32.mxu0 %vm4555_vm1, %v4554_v2 }
0x1385   : > { %4044 = vmatprep.subr.mxu0 %v4554_v2 }
0x1386   : > { %4045 = vmatpush3.msra.mxu0 %v4826_v41 }
0x1387   : > { %4046 = vmatprep.subr.mxu0 %v4554_v2 }
0x1388   : > { %4047 = vmatpush3.msra.mxu0 %v4830_v42 }
0x1389   : > { %4048 = vmatprep.subr.mxu0 %v4554_v2 }
0x138a   : > { %4049 = vmatpush3.msra.mxu0 %v4834_v43 }
0x138b   : > { %4064 = vmatprep.subr.mxu0 %v4554_v2 }
0x1443   : > { %v1780_v20 = vpop.f32.mrf.mxu0 }
0x1444   : > { %v1781_v21 = vadd.f32 %v4810_v35, %v1780_v20 }
0x1445   : > { %v4030_v27 = vpop.f32.mrf.mxu0 }
0x1446   : > { %4383 = vtanh.f32 %v1781_v21 }
0x1453   : > { %v4384_v28 = vpop.eup %4383 }
0x1454   : > { %4040 = vmatmul.mubr.msk.f32.vlgmr.msra.gmra.mxu1 %vm410_vm2, %v4384_v28 }
0x1455   : > { %4054 = vmatpush3.msra.mxu1 %v4767_v23  ;;  %4061 = vmatprep.mubr.msk.f32.mxu1 %vm4555_vm1, %v4554_v2 }
0x1456   : > { %4055 = vmatprep.subr.mxu1 %v4554_v2 }
0x1457   : > { %4056 = vmatpush3.msra.mxu1 %v4769_v24 }
0x1458   : > { %4057 = vmatprep.subr.mxu1 %v4554_v2 }
0x1459   : > { %4058 = vmatpush3.msra.mxu1 %v4773_v25 }
0x145a   : > { %4059 = vmatprep.subr.mxu1 %v4554_v2 }
0x145b   : > { %4060 = vmatpush3.msra.mxu1 %v4777_v26 }
0x145c   : > { %4075 = vmatprep.subr.mxu1 %v4554_v2 }
0x1514   : > { %v1854_v30 = vpop.f32.mrf.mxu1 }
0x1515   : > { %v1855_v36 = vadd.f32 %v4848_v47, %v1854_v30 }
0x1516   : > { %v4041_v37 = vpop.f32.mrf.mxu1 }
0x1517   : > { %4385 = vtanh.f32 %v1855_v36 }
0x1524   : > { %v4386_v38 = vpop.eup %4385 }
0x1525   : > { %4051 = vmatmul.mubr.msk.f32.vlgmr.msra.gmra.mxu0 %vm410_vm2, %v4386_v38 }
0x1526   : > { %4065 = vmatpush3.msra.mxu0 %v4791_v31  ;;  %4072 = vmatprep.mubr.msk.f32.mxu0 %vm4555_vm1, %v4554_v2 }
0x1527   : > { %4066 = vmatprep.subr.mxu0 %v4554_v2 }
0x1528   : > { %4067 = vmatpush3.msra.mxu0 %v4793_v32 }
0x1529   : > { %4068 = vmatprep.subr.mxu0 %v4554_v2 }
0x152a   : > { %4069 = vmatpush3.msra.mxu0 %v4797_v33 }
0x152b   : > { %4070 = vmatprep.subr.mxu0 %v4554_v2 }
0x152c   : > { %4071 = vmatpush3.msra.mxu0 %v4801_v34 }
0x152d   : > { %4086 = vmatprep.subr.mxu0 %v4554_v2 }
0x15e5   : > { %v1928_v39 = vpop.f32.mrf.mxu0 }
0x15e6   : > { %v1929_v44 = vadd.f32 %v4867_v53, %v1928_v39 }
0x15e7   : > { %v4052_v45 = vpop.f32.mrf.mxu0 }
0x15e8   : > { %v1932_v46 = vmul.f32 %v1929_v44, %v4870_v54  ;;  %v2390_v62 = vmul.f32 2.0, %v1929_v44 }
0x15ea   : > { %1934 = vrot.lane.b32.xlu0 %v1932_v46, %s4559_s24  ;;  %v2391_v5 = vadd.f32 %v2390_v62, %v5043_v14  ;;  %v4413_v62 = vld [vmem:[#allocation4 + $0x8] sm:$0xff] }
0x165c   : > { %v1935_v48 = vpop.permute.xlu0 %1934 }
0x165d   : > { %v1937_v49 = vadd.f32 %v1935_v48, %v5003_v4 }
0x165f   : > { %1939 = vrot.lane.b32.xlu1 %v1937_v49, %s4557_s14 }
0x16d1   : > { %v1940_v50 = vpop.permute.xlu1 %1939 }
0x16d2   : > { %4062 = vmatmul.mubr.msk.f32.vlgmr.msra.gmra.mxu1 %vm410_vm2, %v1940_v50 }
0x16d3   : > { %4076 = vmatpush3.msra.mxu1 %v4824_v40  ;;  %4083 = vmatprep.mubr.msk.f32.mxu1 %vm4555_vm1, %v4554_v2 }
0x16d4   : > { %4077 = vmatprep.subr.mxu1 %v4554_v2 }
0x16d5   : > { %4078 = vmatpush3.msra.mxu1 %v4826_v41 }
0x16d6   : > { %4079 = vmatprep.subr.mxu1 %v4554_v2 }
0x16d7   : > { %4080 = vmatpush3.msra.mxu1 %v4830_v42 }
0x16d8   : > { %4081 = vmatprep.subr.mxu1 %v4554_v2 }
0x16d9   : > { %4082 = vmatpush3.msra.mxu1 %v4834_v43 }
0x16da   : > { %4097 = vmatprep.subr.mxu1 %v4554_v2 }
0x1792   : > { %v2009_v51 = vpop.f32.mrf.mxu1 }
0x1793   : > { %v2010_v55 = vadd.f32 %v4810_v35, %v2009_v51 }
0x1794   : > { %v4063_v56 = vpop.f32.mrf.mxu1 }
0x1795   : > { %4387 = vtanh.f32 %v2010_v55 }
0x17a2   : > { %v4388_v57 = vpop.eup %4387 }
0x17a3   : > { %4073 = vmatmul.mubr.msk.f32.vlgmr.msra.gmra.mxu0 %vm410_vm2, %v4388_v57 }
0x17a4   : > { %4087 = vmatpush3.msra.mxu0 %v4767_v23  ;;  %4094 = vmatprep.mubr.msk.f32.mxu0 %vm4555_vm1, %v4554_v2 }
0x17a5   : > { %4088 = vmatprep.subr.mxu0 %v4554_v2 }
0x17a6   : > { %4089 = vmatpush3.msra.mxu0 %v4769_v24 }
0x17a7   : > { %4090 = vmatprep.subr.mxu0 %v4554_v2 }
0x17a8   : > { %4091 = vmatpush3.msra.mxu0 %v4773_v25 }
0x17a9   : > { %4092 = vmatprep.subr.mxu0 %v4554_v2 }
0x17aa   : > { %4093 = vmatpush3.msra.mxu0 %v4777_v26 }
0x17ab   : > { %4108 = vmatprep.subr.mxu0 %v4554_v2 }
0x1863   : > { %v2083_v58 = vpop.f32.mrf.mxu0 }
0x1864   : > { %v2084_v59 = vadd.f32 %v4848_v47, %v2083_v58 }
0x1865   : > { %v4074_v60 = vpop.f32.mrf.mxu0 }
0x1866   : > { %4389 = vtanh.f32 %v2084_v59  ;;  %v4411_v60 = vld [vmem:[#allocation4 + $0x18] sm:$0xff] }
0x1873   : > { %v4390_v61 = vpop.eup %4389 }
0x1874   : > { %4084 = vmatmul.mubr.msk.f32.vlgmr.msra.gmra.mxu1 %vm410_vm2, %v4390_v61  ;;  %v4412_v61 = vld [vmem:[#allocation4 + $0x10] sm:$0xff] }
0x1875   : > { %4098 = vmatpush3.msra.mxu1 %v4791_v31  ;;  %4105 = vmatprep.mubr.msk.f32.mxu1 %vm4555_vm1, %v4554_v2 }
0x1876   : > { %4099 = vmatprep.subr.mxu1 %v4554_v2 }
0x1877   : > { %4100 = vmatpush3.msra.mxu1 %v4793_v32 }
0x1878   : > { %4101 = vmatprep.subr.mxu1 %v4554_v2 }
0x1879   : > { %4102 = vmatpush3.msra.mxu1 %v4797_v33 }
0x187a   : > { %4103 = vmatprep.subr.mxu1 %v4554_v2 }
0x187b   : > { %4104 = vmatpush3.msra.mxu1 %v4801_v34 }
0x187c   : > { %4119 = vmatprep.subr.mxu1 %v4554_v2 }
0x1934   : > { %v2157_v63 = vpop.f32.mrf.mxu1 }
0x1935   : > { %v2158_v1 = vadd.f32 %v4867_v53, %v2157_v63 }
0x1936   : > { %v4085_v3 = vpop.f32.mrf.mxu1 }
0x1937   : > { %v2161_v29 = vmul.f32 %v2158_v1, %v4862_v52  ;;  %v2392_v6 = vmul.f32 2.0, %v2158_v1 }
0x1939   : > { %2163 = vrot.lane.b32.xlu0 %v2161_v29, %s4559_s24  ;;  %v2393_v7 = vadd.f32 %v2392_v6, %v2391_v5 }
0x19ab   : > { %v2164_v8 = vpop.permute.xlu0 %2163 }
0x19ac   : > { %v2166_v9 = vadd.f32 %v2164_v8, %v5003_v4 }
0x19ae   : > { %2168 = vrot.lane.b32.xlu1 %v2166_v9, %s4557_s14 }
0x1a20   : > { %v2169_v10 = vpop.permute.xlu1 %2168 }
0x1a21   : > { %4095 = vmatmul.mubr.msk.f32.vlgmr.msra.gmra.mxu0 %vm410_vm2, %v2169_v10 }
0x1a22   : > { %4109 = vmatpush3.msra.mxu0 %v4824_v40  ;;  %4116 = vmatprep.mubr.msk.f32.mxu0 %vm4555_vm1, %v4554_v2 }
0x1a23   : > { %4110 = vmatprep.subr.mxu0 %v4554_v2 }
0x1a24   : > { %4111 = vmatpush3.msra.mxu0 %v4826_v41 }
0x1a25   : > { %4112 = vmatprep.subr.mxu0 %v4554_v2 }
0x1a26   : > { %4113 = vmatpush3.msra.mxu0 %v4830_v42 }
0x1a27   : > { %4114 = vmatprep.subr.mxu0 %v4554_v2 }
0x1a28   : > { %4115 = vmatpush3.msra.mxu0 %v4834_v43 }
0x1a29   : > { %4130 = vmatprep.subr.mxu0 %v4554_v2 }
0x1ae1   : > { %v2238_v11 = vpop.f32.mrf.mxu0 }
0x1ae2   : > { %v2239_v12 = vadd.f32 %v4810_v35, %v2238_v11 }
0x1ae3   : > { %v4096_v13 = vpop.f32.mrf.mxu0 }
0x1ae4   : > { %4391 = vtanh.f32 %v2239_v12  ;;  %v4416_v12 = vld [vmem:[#allocation4 + $0x38] sm:$0xff]  ;;  %v4417_v13 = vld [vmem:[#allocation4 + $0x30] sm:$0xff] }
0x1af1   : > { %v4392_v14 = vpop.eup %4391 }
0x1af2   : > { %4106 = vmatmul.mubr.msk.f32.vlgmr.msra.gmra.mxu1 %vm410_vm2, %v4392_v14  ;;  %v4418_v14 = vld [vmem:[#allocation4 + $0x28] sm:$0xff] }
0x1af3   : > { %4120 = vmatpush3.msra.mxu1 %v4767_v23  ;;  %4127 = vmatprep.mubr.msk.f32.mxu1 %vm4555_vm1, %v4554_v2 }
0x1af4   : > { %4121 = vmatprep.subr.mxu1 %v4554_v2 }
0x1af5   : > { %4122 = vmatpush3.msra.mxu1 %v4769_v24 }
0x1af6   : > { %4123 = vmatprep.subr.mxu1 %v4554_v2 }
0x1af7   : > { %4124 = vmatpush3.msra.mxu1 %v4773_v25 }
0x1af8   : > { %4125 = vmatprep.subr.mxu1 %v4554_v2 }
0x1af9   : > { %4126 = vmatpush3.msra.mxu1 %v4777_v26 }
0x1afa   : > { %4141 = vmatprep.subr.mxu1 %v4554_v2 }
0x1bb2   : > { %v2312_v15 = vpop.f32.mrf.mxu1 }
0x1bb3   : > { %v2313_v16 = vadd.f32 %v4848_v47, %v2312_v15 }
0x1bb4   : > { %v4107_v17 = vpop.f32.mrf.mxu1 }
0x1bb5   : > { %4393 = vtanh.f32 %v2313_v16 }
0x1bc2   : > { %v4394_v18 = vpop.eup %4393 }
0x1bc3   : > { %4117 = vmatmul.mubr.msk.f32.vlgmr.msra.gmra.mxu0 %vm410_vm2, %v4394_v18 }
0x1bc4   : > { %4131 = vmatpush3.msra.mxu0 %v4791_v31  ;;  %4138 = vmatprep.mubr.msk.f32.mxu0 %vm4555_vm1, %v4554_v2 }
0x1bc5   : > { %4132 = vmatprep.subr.mxu0 %v4554_v2 }
0x1bc6   : > { %4133 = vmatpush3.msra.mxu0 %v4793_v32 }
0x1bc7   : > { %4134 = vmatprep.subr.mxu0 %v4554_v2 }
0x1bc8   : > { %4135 = vmatpush3.msra.mxu0 %v4797_v33 }
0x1bc9   : > { %4136 = vmatprep.subr.mxu0 %v4554_v2 }
0x1bca   : > { %4137 = vmatpush3.msra.mxu0 %v4801_v34 }
0x1bcb   : > { %4152 = vmatprep.subr.mxu0 %v4554_v2 }
0x1c83   : > { %v2386_v19 = vpop.f32.mrf.mxu0 }
0x1c84   : > { %v2387_v20 = vadd.f32 %v4867_v53, %v2386_v19 }
0x1c85   : > { %v4118_v21 = vpop.f32.mrf.mxu0 }
0x1c86   : > { %v2394_v27 = vadd.f32 %v2393_v7, %v2387_v20 }
0x1c88   : > { %v2395_v28 = vmul.f32 %v2394_v27, %v4998_v0 }
0x1c8a   : > { %2397 = vrot.lane.b32.xlu0 %v2395_v28, %s4559_s24 }
0x1cfc   : > { %v2398_v30 = vpop.permute.xlu0 %2397 }
0x1cfd   : > { %v5170_v36 = vadd.f32 %v2398_v30, %v5003_v4 }
0x1cff   : > { %2402 = vrot.lane.b32.xlu1 %v5170_v36, %s4557_s14 }
0x1d71   : > { %v2403_v37 = vpop.permute.xlu1 %2402 }
0x1d72   : > { %4128 = vmatmul.mubr.msk.f32.vlgmr.msra.gmra.mxu1 %vm410_vm2, %v2403_v37 }
0x1d73   : > { %4142 = vmatpush3.msra.mxu1 %v4824_v40  ;;  %4149 = vmatprep.mubr.msk.f32.mxu1 %vm4555_vm1, %v4554_v2 }
0x1d74   : > { %4143 = vmatprep.subr.mxu1 %v4554_v2 }
0x1d75   : > { %4144 = vmatpush3.msra.mxu1 %v4826_v41 }
0x1d76   : > { %4145 = vmatprep.subr.mxu1 %v4554_v2 }
0x1d77   : > { %4146 = vmatpush3.msra.mxu1 %v4830_v42 }
0x1d78   : > { %4147 = vmatprep.subr.mxu1 %v4554_v2 }
0x1d79   : > { %4148 = vmatpush3.msra.mxu1 %v4834_v43 }
0x1d7a   : > { %4163 = vmatprep.subr.mxu1 %v4554_v2 }
0x1e32   : > { %v2472_v4 = vpop.f32.mrf.mxu1 }
0x1e33   : > { %v2473_v38 = vadd.f32 %v4810_v35, %v2472_v4  ;;  %v4420_v4 = vld [vmem:[#allocation4 + $0x58] sm:$0xff] }
0x1e34   : > { %v4129_v39 = vpop.f32.mrf.mxu1 }
0x1e35   : > { %4395 = vtanh.f32 %v2473_v38  ;;  %v4423_v38 = vld [vmem:[#allocation4 + $0x40] sm:$0xff] }
0x1e42   : > { %v4396_v44 = vpop.eup %4395 }
0x1e43   : > { %4139 = vmatmul.mubr.msk.f32.vlgmr.msra.gmra.mxu0 %vm410_vm2, %v4396_v44 }
0x1e44   : > { %4153 = vmatpush3.msra.mxu0 %v4767_v23  ;;  %4160 = vmatprep.mubr.msk.f32.mxu0 %vm4555_vm1, %v4554_v2 }
0x1e45   : > { %4154 = vmatprep.subr.mxu0 %v4554_v2 }
0x1e46   : > { %4155 = vmatpush3.msra.mxu0 %v4769_v24 }
0x1e47   : > { %4156 = vmatprep.subr.mxu0 %v4554_v2 }
0x1e48   : > { %4157 = vmatpush3.msra.mxu0 %v4773_v25 }
0x1e49   : > { %4158 = vmatprep.subr.mxu0 %v4554_v2 }
0x1e4a   : > { %4159 = vmatpush3.msra.mxu0 %v4777_v26 }
0x1e4b   : > { %4174 = vmatprep.subr.mxu0 %v4554_v2 }
0x1f03   : > { %v2546_v45 = vpop.f32.mrf.mxu0 }
0x1f04   : > { %v2547_v23 = vadd.f32 %v4848_v47, %v2546_v45 }
0x1f05   : > { %v4140_v46 = vpop.f32.mrf.mxu0 }
0x1f06   : > { %4397 = vtanh.f32 %v2547_v23 }
0x1f13   : > { %v4398_v48 = vpop.eup %4397 }
0x1f14   : > { %4150 = vmatmul.mubr.msk.f32.vlgmr.msra.gmra.mxu1 %vm410_vm2, %v4398_v48  ;;  %v4424_v48 = vld [vmem:[%s5392_s4 + $0x1] ss:$0 sm:$0xff] }
0x1f15   : > { %4164 = vmatpush3.msra.mxu1 %v4791_v31  ;;  %4171 = vmatprep.mubr.msk.f32.mxu1 %vm4555_vm1, %v4554_v2 }
0x1f16   : > { %4165 = vmatprep.subr.mxu1 %v4554_v2 }
0x1f17   : > { %4166 = vmatpush3.msra.mxu1 %v4793_v32 }
0x1f18   : > { %4167 = vmatprep.subr.mxu1 %v4554_v2 }
0x1f19   : > { %4168 = vmatpush3.msra.mxu1 %v4797_v33 }
0x1f1a   : > { %4169 = vmatprep.subr.mxu1 %v4554_v2 }
0x1f1b   : > { %4170 = vmatpush3.msra.mxu1 %v4801_v34 }
0x1f1c   : > { %4185 = vmatprep.subr.mxu1 %v4554_v2 }
0x1fd4   : > { %v2620_v24 = vpop.f32.mrf.mxu1 }
0x1fd5   : > { %v5210_v25 = vadd.f32 %v4867_v53, %v2620_v24 }
0x1fd6   : > { %v4151_v26 = vpop.f32.mrf.mxu1 }
0x1fd7   : > { %v2624_v49 = vmul.f32 %v5210_v25, %v4870_v54 }
0x1fd9   : > { %2626 = vrot.lane.b32.xlu0 %v2624_v49, %s4559_s24  ;;  %v3336_v49 = vld [vmem:[%s5393_s5 + $0x18] sm:$0xff] }
0x204b   : > { %v2627_v50 = vpop.permute.xlu0 %2626 }
0x204c   : > { %v2629_v51 = vadd.f32 %v2627_v50, %v5170_v36  ;;  %v3335_v50 = vld [vmem:[%s5393_s5 + $0x10] sm:$0xff] }
0x204e   : > { %2631 = vrot.lane.b32.xlu1 %v2629_v51, %s4557_s14 }
0x20c0   : > { %v2632_v55 = vpop.permute.xlu1 %2631 }
0x20c1   : > { %4161 = vmatmul.mubr.msk.f32.vlgmr.msra.gmra.mxu0 %vm410_vm2, %v2632_v55  ;;  %v3334_v55 = vld [vmem:[%s5393_s5 + $0x8] sm:$0xff] }
0x20c2   : > { %4175 = vmatpush3.msra.mxu0 %v4824_v40  ;;  %4182 = vmatprep.mubr.msk.f32.mxu0 %vm4555_vm1, %v4554_v2 }
0x20c3   : > { %4176 = vmatprep.subr.mxu0 %v4554_v2 }
0x20c4   : > { %4177 = vmatpush3.msra.mxu0 %v4826_v41 }
0x20c5   : > { %4178 = vmatprep.subr.mxu0 %v4554_v2 }
0x20c6   : > { %4179 = vmatpush3.msra.mxu0 %v4830_v42 }
0x20c7   : > { %4180 = vmatprep.subr.mxu0 %v4554_v2 }
0x20c8   : > { %4181 = vmatpush3.msra.mxu0 %v4834_v43 }
0x20c9   : > { %4196 = vmatprep.subr.mxu0 %v4554_v2 }
0x2181   : > { %v2701_v56 = vpop.f32.mrf.mxu0 }
0x2182   : > { %v2702_v57 = vadd.f32 %v4810_v35, %v2701_v56  ;;  %v4414_v35 = vld [vmem:[#allocation4] sm:$0xff]  ;;  %v4425_v56 = vld [vmem:[%s5392_s4 + $0x2] ss:$0 sm:$0xff] }
0x2183   : > { %v4162_v58 = vpop.f32.mrf.mxu0 }
0x2184   : > { %4399 = vtanh.f32 %v2702_v57 }
0x2191   : > { %v4400_v59 = vpop.eup %4399 }
0x2192   : > { %4172 = vmatmul.mubr.msk.f32.vlgmr.msra.gmra.mxu1 %vm410_vm2, %v4400_v59  ;;  %v3333_v59 = vld [vmem:[%s5393_s5] sm:$0xff] }
0x2193   : > { %4186 = vmatpush3.msra.mxu1 %v4411_v60  ;;  %4193 = vmatprep.mubr.msk.f32.mxu1 %vm4555_vm1, %v4554_v2 }
0x2194   : > { %4187 = vmatprep.subr.mxu1 %v4554_v2 }
0x2195   : > { %4188 = vmatpush3.msra.mxu1 %v4412_v61 }
0x2196   : > { %4189 = vmatprep.subr.mxu1 %v4554_v2 }
0x2197   : > { %4190 = vmatpush3.msra.mxu1 %v4413_v62 }
0x2198   : > { %4191 = vmatprep.subr.mxu1 %v4554_v2 }
0x2199   : > { %4192 = vmatpush3.msra.mxu1 %v4414_v35 }
0x219a   : > { %4207 = vmatprep.subr.mxu1 %v4554_v2 }
0x2252   : > { %v2775_v63 = vpop.f32.mrf.mxu1 }
0x2253   : > { %v2776_v1 = vadd.f32 %v4848_v47, %v2775_v63 }
0x2254   : > { %v4173_v3 = vpop.f32.mrf.mxu1 }
0x2255   : > { %4401 = vtanh.f32 %v2776_v1 }
0x2262   : > { %v4402_v5 = vpop.eup %4401 }
0x2263   : > { %4183 = vmatmul.mubr.msk.f32.vlgmr.msra.gmra.mxu0 %vm410_vm2, %v4402_v5 }
0x2264   : > { %4197 = vmatpush3.msra.mxu0 %v4791_v31  ;;  %4204 = vmatprep.mubr.msk.f32.mxu0 %vm4555_vm1, %v4554_v2 }
0x2265   : > { %4198 = vmatprep.subr.mxu0 %v4554_v2 }
0x2266   : > { %4199 = vmatpush3.msra.mxu0 %v4793_v32 }
0x2267   : > { %4200 = vmatprep.subr.mxu0 %v4554_v2 }
0x2268   : > { %4201 = vmatpush3.msra.mxu0 %v4797_v33 }
0x2269   : > { %4202 = vmatprep.subr.mxu0 %v4554_v2 }
0x226a   : > { %4203 = vmatpush3.msra.mxu0 %v4801_v34 }
0x226b   : > { %4218 = vmatprep.subr.mxu0 %v4554_v2 }
0x2323   : > { %v2849_v29 = vpop.f32.mrf.mxu0 }
0x2324   : > { %v2850_v31 = vadd.f32 %v4867_v53, %v2849_v29 }
0x2325   : > { %v4184_v6 = vpop.f32.mrf.mxu0 }
0x2326   : > { %v2853_v7 = vmul.f32 %v2850_v31, %v4870_v54  ;;  %v3311_v15 = vmul.f32 2.0, %v2850_v31 }
0x2328   : > { %2855 = vrot.lane.b32.xlu0 %v2853_v7, %s4559_s24  ;;  %v3312_v19 = vadd.f32 %v3311_v15, %v5210_v25 }
0x239a   : > { %v2856_v8 = vpop.permute.xlu0 %2855 }
0x239b   : > { %v2858_v32 = vadd.f32 %v2856_v8, %v5170_v36 }
0x239d   : > { %2860 = vrot.lane.b32.xlu1 %v2858_v32, %s4557_s14 }
0x240f   : > { %v2861_v33 = vpop.permute.xlu1 %2860 }
0x2410   : > { %4194 = vmatmul.mubr.msk.f32.vlgmr.msra.gmra.mxu1 %vm410_vm2, %v2861_v33 }
0x2411   : > { %4208 = vmatpush3.msra.mxu1 %v4824_v40  ;;  %4215 = vmatprep.mubr.msk.f32.mxu1 %vm4555_vm1, %v4554_v2  ;;  %v4415_v40 = vld [vmem:[%s5392_s4] ss:$0 sm:$0xff] }
0x2412   : > { %4209 = vmatprep.subr.mxu1 %v4554_v2 }
0x2413   : > { %4210 = vmatpush3.msra.mxu1 %v4826_v41 }
0x2414   : > { %4211 = vmatprep.subr.mxu1 %v4554_v2 }
0x2415   : > { %4212 = vmatpush3.msra.mxu1 %v4830_v42 }
0x2416   : > { %4213 = vmatprep.subr.mxu1 %v4554_v2 }
0x2417   : > { %4214 = vmatpush3.msra.mxu1 %v4834_v43 }
0x2418   : > { %4229 = vmatprep.subr.mxu1 %v4554_v2 }
0x24d0   : > { %v2930_v34 = vpop.f32.mrf.mxu1 }
0x24d1   : > { %v2931_v54 = vadd.f32 %v4415_v40, %v2930_v34 }
0x24d2   : > { %v4195_v9 = vpop.f32.mrf.mxu1 }
0x24d3   : > { %4403 = vtanh.f32 %v2931_v54 }
0x24e0   : > { %v4404_v10 = vpop.eup %4403 }
0x24e1   : > { %4205 = vmatmul.mubr.msk.f32.vlgmr.msra.gmra.mxu0 %vm410_vm2, %v4404_v10 }
0x24e2   : > { %4219 = vmatpush3.msra.mxu0 %v4411_v60  ;;  %4226 = vmatprep.mubr.msk.f32.mxu0 %vm4555_vm1, %v4554_v2 }
0x24e3   : > { %4220 = vmatprep.subr.mxu0 %v4554_v2 }
0x24e4   : > { %4221 = vmatpush3.msra.mxu0 %v4412_v61 }
0x24e5   : > { %4222 = vmatprep.subr.mxu0 %v4554_v2 }
0x24e6   : > { %4223 = vmatpush3.msra.mxu0 %v4413_v62 }
0x24e7   : > { %4224 = vmatprep.subr.mxu0 %v4554_v2 }
0x24e8   : > { %4225 = vmatpush3.msra.mxu0 %v4414_v35 }
0x24e9   : > { %4240 = vmatprep.subr.mxu0 %v4554_v2 }
0x25a1   : > { %v3004_v41 = vpop.f32.mrf.mxu0 }
0x25a2   : > { %v3005_v42 = vadd.f32 %v4848_v47, %v3004_v41  ;;  %v4419_v47 = vld [vmem:[#allocation4 + $0x20] sm:$0xff] }
0x25a3   : > { %v4206_v43 = vpop.f32.mrf.mxu0 }
0x25a4   : > { %4405 = vtanh.f32 %v3005_v42 }
0x25b1   : > { %v4406_v11 = vpop.eup %4405 }
0x25b2   : > { %4216 = vmatmul.mubr.msk.f32.vlgmr.msra.gmra.mxu1 %vm410_vm2, %v4406_v11 }
0x25b3   : > { %4230 = vmatpush3.msra.mxu1 %v4416_v12  ;;  %4237 = vmatprep.mubr.msk.f32.mxu1 %vm4555_vm1, %v4554_v2 }
0x25b4   : > { %4231 = vmatprep.subr.mxu1 %v4554_v2 }
0x25b5   : > { %4232 = vmatpush3.msra.mxu1 %v4417_v13 }
0x25b6   : > { %4233 = vmatprep.subr.mxu1 %v4554_v2 }
0x25b7   : > { %4234 = vmatpush3.msra.mxu1 %v4418_v14 }
0x25b8   : > { %4235 = vmatprep.subr.mxu1 %v4554_v2 }
0x25b9   : > { %4236 = vmatpush3.msra.mxu1 %v4419_v47 }
0x25ba   : > { %4251 = vmatprep.subr.mxu1 %v4554_v2 }
0x2672   : > { %v3078_v16 = vpop.f32.mrf.mxu1 }
0x2673   : > { %v3079_v17 = vadd.f32 %v4867_v53, %v3078_v16  ;;  %v4422_v53 = vld [vmem:[#allocation4 + $0x48] sm:$0xff] }
0x2674   : > { %v4217_v18 = vpop.f32.mrf.mxu1 }
0x2675   : > { %v3082_v20 = vmul.f32 %v3079_v17, %v4862_v52  ;;  %v3313_v21 = vmul.f32 2.0, %v3079_v17  ;;  %v4421_v52 = vld [vmem:[#allocation4 + $0x50] sm:$0xff] }
0x2677   : > { %3084 = vrot.lane.b32.xlu0 %v3082_v20, %s4559_s24  ;;  %v3314_v27 = vadd.f32 %v3313_v21, %v3312_v19 }
0x26e9   : > { %v3085_v28 = vpop.permute.xlu0 %3084 }
0x26ea   : > { %v3087_v30 = vadd.f32 %v3085_v28, %v5170_v36 }
0x26ec   : > { %3089 = vrot.lane.b32.xlu1 %v3087_v30, %s4557_s14 }
0x275e   : > { %v3090_v37 = vpop.permute.xlu1 %3089 }
0x275f   : > { %4227 = vmatmul.mubr.msk.f32.vlgmr.msra.gmra.mxu0 %vm410_vm2, %v3090_v37 }
0x2760   : > { %4241 = vmatpush3.msra.mxu0 %v4420_v4  ;;  %4248 = vmatprep.mubr.msk.f32.mxu0 %vm4555_vm1, %v4554_v2 }
0x2761   : > { %4242 = vmatprep.subr.mxu0 %v4554_v2 }
0x2762   : > { %4243 = vmatpush3.msra.mxu0 %v4421_v52 }
0x2763   : > { %4244 = vmatprep.subr.mxu0 %v4554_v2 }
0x2764   : > { %4245 = vmatpush3.msra.mxu0 %v4422_v53 }
0x2765   : > { %4246 = vmatprep.subr.mxu0 %v4554_v2 }
0x2766   : > { %4247 = vmatpush3.msra.mxu0 %v4423_v38 }
0x281f   : > { %v3159_v39 = vpop.f32.mrf.mxu0 }
0x2820   : > { %v3160_v44 = vadd.f32 %v4415_v40, %v3159_v39 }
0x2821   : > { %v4228_v45 = vpop.f32.mrf.mxu0 }
0x2822   : > { %4407 = vtanh.f32 %v3160_v44 }
0x282f   : > { %v4408_v23 = vpop.eup %4407 }
0x2830   : > { %4238 = vmatmul.mubr.msk.f32.vlgmr.msra.gmra.mxu1 %vm410_vm2, %v4408_v23 }
0x2831   : > { %4259 = vmatprep.mubr.msk.f32.mxu1 %vm4555_vm1, %v4554_v2  ;;  %4252 = vmatpush3.msra.mxu1 %v3336_v49 }
0x2832   : > { %4253 = vmatprep.subr.mxu1 %v4554_v2 }
0x2833   : > { %4254 = vmatpush3.msra.mxu1 %v3335_v50 }
0x2834   : > { %4255 = vmatprep.subr.mxu1 %v4554_v2 }
0x2835   : > { %4256 = vmatpush3.msra.mxu1 %v3334_v55 }
0x2836   : > { %4257 = vmatprep.subr.mxu1 %v4554_v2 }
0x2837   : > { %4258 = vmatpush3.msra.mxu1 %v3333_v59 }
0x28f0   : > { %v3233_v46 = vpop.f32.mrf.mxu1 }
0x28f1   : > { %v3234_v24 = vadd.f32 %v4424_v48, %v3233_v46 }
0x28f2   : > { %v4239_v25 = vpop.f32.mrf.mxu1 }
0x28f3   : > { %4409 = vtanh.f32 %v3234_v24 }
0x2900   : > { %v4410_v26 = vpop.eup %4409 }
0x2901   : > { %4249 = vmatmul.mubr.msk.f32.vlgmr.msra.gmra.mxu0 %vm410_vm2, %v4410_v26 }
0x29c1   : > { %v3307_v51 = vpop.f32.mrf.mxu0 }
0x29c2   : > { %v3308_v57 = vadd.f32 %v4425_v56, %v3307_v51 }
0x29c3   : > { %v4250_v58 = vpop.f32.mrf.mxu0 }
0x29c4   : > { %v3315_v60 = vadd.f32 %v3314_v27, %v3308_v57 }
0x29c6   : > { %v3316_v61 = vmul.f32 %v3315_v60, %v4998_v0 }
0x29c8   : > { %3318 = vrot.lane.b32.xlu0 %v3316_v61, %s4559_s24 }
0x29cc   : > { %3328 = vrot.lane.b32.xlu0 %v4764_v22, %s4559_s24  ;;  %s3441_s24 = sadd.s32 %s4536_s9, %s3650_s16 }
0x29cd   : > { %s3651_s10 = sshll.u32 %s3441_s24, 7 }
0x2a3a   : > { %v3319_v62 = vpop.permute.xlu0 %3318 }
0x2a3b   : > { %v3321_v35 = vadd.f32 %v3319_v62, %v5170_v36 }
0x2a3d   : > { %3323 = vrot.lane.b32.xlu1 %v3321_v35, %s4557_s14  ;;  %s3443_s14 = scalar_lea.hbm %s5396_s8, %s3651_s10 }
0x2a3e   : > { %v3329_v63 = vpop.permute.xlu0 %3328 }
0x2a3f   : > { %3331 = vst.msk [vmem:[#allocation3] sm:$0xff] %vm410_vm2, %v3329_v63 }
0x2aaf   : > { %v3324_v2 = vpop.permute.xlu1 %3323 }
0x2ab0   : > { %3326 = vst.msk [vmem:[#allocation2] sm:$0xff] %vm410_vm2, %v3324_v2  ;;  %3332 = vst.msk [vmem:[%s371_s29] sm:$0xff] %vm410_vm2, %v3324_v2  ;;  %4260 = vmatmul.mubr.msk.f32.vlgmr.msra.gmra.mxu1 %vm410_vm2, %v3324_v2 }
0x2ab1   : > { %4465 = shalt.err (!%p4462_p7)
}
0x2ab2   : > { %s4466_s29 = scalar_lea.hbm %s3443_s14, 128  ;;  %s4470_s16 = scalar_lea.hbm %s5396_s8, 2048 }
0x2ab3   : > { %p4467_p9 = scmp.ne.s32.totalorder %s3443_s14, %s4466_s29  ;;  %p4471_p0 = scmp.lt.s32.totalorder %s3443_s14, %s5396_s8 }
0x2ab4   : > { %p4472_p10 = scmp.lt.s32.totalorder %s4470_s16, %s4466_s29 }
0x2ab5   : > { %p4468_p11 = pnand %p4467_p9, %p4658_p3 }
0x2ab6   : > { %p4473_p12 = por %p4472_p10, %p4471_p0 }
0x2ab7   : > { %p4469_p13 = pneg %p4468_p11 }
0x2ab9   : > { %p4474_p1 = pnand %p4473_p12, %p4469_p13 }
0x2abb   : > { %4477 = shalt.err (!%p4474_p1)
}
0x2abc   : > { %4266 = dma.vmem_to_hbm [thread:$0]  (%p4658_p3), %s3446_s11, 128, %s3443_s14, %s3427_s26   ;;  %v3647_v22 = vld [vmem:[%s5394_s6] ss:$0 sm:$0xff]  ;;  %vm3416_vm3 = vcmask 64512  }
0x2b70   : > { %v3412_v0 = vpop.f32.mrf.mxu1 }
0x2b71   : > { %v3413_v36 = vadd.f32 %v3647_v22, %v3412_v0 }
0x2b72   : > { %v4261_v1 = vpop.f32.mrf.mxu1 }
0x2b73   : > { %3417 = vst.msk [vmem:[%s395_s25] sm:$0xff] %vm3416_vm3, %v3413_v36 }
0x2b74 PF: > { %p4278_p2 = scmp.ge.s32.totalorder %s4548_s12, 2  ;;  %s3468_s19 = sand.u32 1, %s4520_s27  }
0x2b75   : > { %s3469_s11 = scalar_lea.sflag [#allocation6], %s3468_s19 }
0x2b76   : > { %p4273_p3 = pnand %p4278_p2, %p4667_p8 }
0x2b78   : > { %p4274_p4 = pneg %p4273_p3 }
0x2b7a   : > { %4515 = dma.done.wait (%p4274_p4), %s3469_s11, 128  }
0x2b7b   : > { %4517 = vsyncadd (%p4274_p4), %s3469_s11, 4294967168  ;;  %s23_s12 = sadd.s32 1, %s4548_s12   ;;  %s5417_s14 = sld [smem:[#allocation10_spill]] }
0x2b7c   : > { %p20_p5 = scmp.ge.s32.totalorder %s23_s12, 18   ;;  %s5418_s29 = sld [smem:[#allocation15_spill]] }
0x2b7d   : > { %s5419_s30 = sld [smem:[#allocation11_spill]]  ;;  %s5423_s27 = smov %s4524_s28 }
0x2b7e   : > { %s5420_s9 = sld [smem:[#allocation12_spill]]  ;;  %22 = sbr.rel (!%p20_p5) target bundleno = 8 (0x8), region = 111 }
0x2b7f   : > { %s5421_s10 = sld [smem:[#allocation13_spill]] }
0x2b80   : > { %s5422_s11 = sld [smem:[#allocation14_spill]] }
0x2b81   : > { %s5424_s28 = smov %s5417_s14 }
0x2b83   :  { %3474 = vsyncpa [#allocation5], 1 }
0x2b84   :  { %3476 = vsyncpa [#allocation5 + $0x1], 1 }
0x2b85   :  { %3477 = vsyncpa [#allocation6], 1 }
0x2b86   :  { %3479 = vsyncpa [#allocation6 + $0x1], 1 }

</bundles_post_ra>
